<compile_context>
chip_gen: v6e
topology: v6e:2x2x1
jax: 0.10.0
libtpu: 0.0.40
codegen_flags: <defaults>
</compile_context>

<pallas_src>
import functools
import math

import jax
import jax.numpy as jnp
from jax.experimental import pallas as pl
from jax.experimental.pallas import tpu as pltpu

MAX_ROW_TILE = 512                      # rows per grid step
_VMEM_LIMIT = 32 * 1024 * 1024          # fits v5e/v6e (128 MiB) and v7x (64 MiB)

_CP1 = pltpu.CompilerParams(dimension_semantics=("parallel",),
                            vmem_limit_bytes=_VMEM_LIMIT)


# ----------------------------- in-kernel math ------------------------------

_GELU_C = math.sqrt(2.0 / math.pi)


def _gelu(x):
    # BERT/QAGNN tanh-approximate GELU (EUP tanh instead of a VPU polynomial).
    # TODO(synk): verify target checkpoint uses QAGNN's tanh GELU, not erf nn.GELU.
    return 0.5 * x * (1.0 + jnp.tanh(_GELU_C * (x + 0.044715 * x * x * x)))


def _apply_act(y, act):
    if act == "gelu":
        return _gelu(y)
    if act == "relu":
        return jnp.maximum(y, 0.0)
    return y


def _round_up(x, m):
    return ((x + m - 1) // m) * m


def _pick_tile(rows, max_tile=MAX_ROW_TILE):
    """16-sublane-aligned row tile, <= max_tile, >=2 grid steps when possible,
    and row padding kept below one tile."""
    half = _round_up(max(1, (rows + 1) // 2), 16)
    return min(max_tile, half)


def _pad_rows_to(x, rows_p):
    r = x.shape[0]
    if rows_p == r:
        return x
    return jnp.pad(x, [(0, rows_p - r)] + [(0, 0)] * (x.ndim - 1))


# ----------------------------- Pallas kernels ------------------------------

def _linear_act_kernel(x_ref, w_ref, b_ref, o_ref, *, act):
    y = jnp.dot(x_ref[...], w_ref[...],
                preferred_element_type=jnp.float32) + b_ref[...]
    o_ref[...] = _apply_act(y, act).astype(o_ref.dtype)


def linear_act(xp_bf16, w, b, act, tile, out_dtype=jnp.bfloat16):
    """y = act(x @ w + b) on a row-padded bf16 input."""
    Rp, K = xp_bf16.shape
    Dout = w.shape[1]
    return pl.pallas_call(
        functools.partial(_linear_act_kernel, act=act),
        out_shape=jax.ShapeDtypeStruct((Rp, Dout), out_dtype),
        grid=(Rp // tile,),
        in_specs=[pl.BlockSpec((tile, K), lambda i: (i, 0)),
                  pl.BlockSpec((K, Dout), lambda i: (0, 0)),
                  pl.BlockSpec((1, Dout), lambda i: (0, 0))],
        out_specs=pl.BlockSpec((tile, Dout), lambda i: (i, 0)),
        compiler_params=_CP1,
    )(xp_bf16, w.astype(jnp.bfloat16), b.reshape(1, Dout).astype(jnp.float32))


def _mlp2_kernel(x_ref, w1_ref, b1_ref, w2_ref, b2_ref, o_ref, *, out_act):
    f32 = jnp.float32
    h = jnp.dot(x_ref[...], w1_ref[...], preferred_element_type=f32) + b1_ref[...]
    h = jnp.maximum(h, 0.0)                               # folded BN + ReLU
    y = jnp.dot(h.astype(jnp.bfloat16), w2_ref[...],
                preferred_element_type=f32) + b2_ref[...]
    o_ref[...] = _apply_act(y, out_act).astype(o_ref.dtype)


def mlp2(xp_bf16, w1, b1, w2, b2, tile, out_act, out_dtype=jnp.bfloat16):
    """act(Linear(ReLU(Linear(x)))) with BN folded into the first Linear."""
    Rp, K = xp_bf16.shape
    Dh = w1.shape[1]
    Dout = w2.shape[1]
    return pl.pallas_call(
        functools.partial(_mlp2_kernel, out_act=out_act),
        out_shape=jax.ShapeDtypeStruct((Rp, Dout), out_dtype),
        grid=(Rp // tile,),
        in_specs=[pl.BlockSpec((tile, K), lambda i: (i, 0)),
                  pl.BlockSpec((K, Dh), lambda i: (0, 0)),
                  pl.BlockSpec((1, Dh), lambda i: (0, 0)),
                  pl.BlockSpec((Dh, Dout), lambda i: (0, 0)),
                  pl.BlockSpec((1, Dout), lambda i: (0, 0))],
        out_specs=pl.BlockSpec((tile, Dout), lambda i: (i, 0)),
        compiler_params=_CP1,
    )(xp_bf16, w1.astype(jnp.bfloat16), b1.reshape(1, Dh).astype(jnp.float32),
      w2.astype(jnp.bfloat16), b2.reshape(1, Dout).astype(jnp.float32))


def _gat_edge_kernel(xi_ref, ni_ref, xj_ref, nj_ref, ee_ref,
                     wxi_ref, wni_ref, wee_ref, wxj_ref, wnj_ref,
                     bk_ref, bm_ref, bq_ref, sel_ref,
                     scores_ref, msg_ref, *, emb_dim, inv_sqrt_dph):
    f32 = jnp.float32
    D = emb_dim
    # 5 merged matmuls (operands sharing an LHS concatenated along output dim)
    ee2 = jnp.dot(ee_ref[...], wee_ref[...], preferred_element_type=f32)  # [key_ee | msg_ee]
    xj2 = jnp.dot(xj_ref[...], wxj_ref[...], preferred_element_type=f32)  # [msg_x  | qry_x ]
    nj2 = jnp.dot(nj_ref[...], wnj_ref[...], preferred_element_type=f32)  # [msg_n  | qry_n ]
    key = (jnp.dot(xi_ref[...], wxi_ref[...], preferred_element_type=f32)
           + jnp.dot(ni_ref[...], wni_ref[...], preferred_element_type=f32)
           + ee2[:, :D] + bk_ref[...])
    msg = xj2[:, :D] + nj2[:, :D] + ee2[:, D:] + bm_ref[...]
    query = (xj2[:, D:] + nj2[:, D:] + bq_ref[...]) * inv_sqrt_dph
    # per-head dot(query, key) via a 0/1 head-selector matmul; operands cast to
    # bf16 explicitly (one MXU pass, f32 accumulation) -> narrow (tile, 8) store
    qk = (query * key).astype(jnp.bfloat16)
    scores_ref[...] = jnp.dot(qk, sel_ref[...], preferred_element_type=f32)
    msg_ref[...] = msg.astype(jnp.bfloat16)


def gat_edge_scores_msg(xi, ni, xj, nj, ee,
                        w_xi, w_ni, w_ee, w_xj, w_nj, bk, bm, bq,
                        sel, tile, emb_dim, dph, score_pad):
    Ep, D = xi.shape
    row = pl.BlockSpec((tile, D), lambda i: (i, 0))
    wD = pl.BlockSpec((D, D), lambda i: (0, 0))
    w2D = pl.BlockSpec((D, 2 * D), lambda i: (0, 0))
    bD = pl.BlockSpec((1, D), lambda i: (0, 0))
    scores, msg = pl.pallas_call(
        functools.partial(_gat_edge_kernel, emb_dim=emb_dim,
                          inv_sqrt_dph=1.0 / math.sqrt(dph)),
        out_shape=(jax.ShapeDtypeStruct((Ep, score_pad), jnp.float32),
                   jax.ShapeDtypeStruct((Ep, D), jnp.bfloat16)),
        grid=(Ep // tile,),
        in_specs=[row, row, row, row, row,
                  wD, wD, w2D, w2D, w2D,
                  bD, bD, bD,
                  pl.BlockSpec((D, score_pad), lambda i: (0, 0))],
        out_specs=(pl.BlockSpec((tile, score_pad), lambda i: (i, 0)),
                   pl.BlockSpec((tile, D), lambda i: (i, 0))),
        compiler_params=_CP1,
    )(xi, ni, xj, nj, ee,
      w_xi.astype(jnp.bfloat16), w_ni.astype(jnp.bfloat16),
      w_ee.astype(jnp.bfloat16), w_xj.astype(jnp.bfloat16),
      w_nj.astype(jnp.bfloat16),
      bk.reshape(1, D).astype(jnp.float32),
      bm.reshape(1, D).astype(jnp.float32),
      bq.reshape(1, D).astype(jnp.float32),
      sel)
    return scores, msg


def _dual_linear_gelu_kernel(h_ref, x_ref, wh_ref, bh_ref, wx_ref, bx_ref, o_ref):
    f32 = jnp.float32
    y = (jnp.dot(h_ref[...], wh_ref[...], preferred_element_type=f32) + bh_ref[...]
         + jnp.dot(x_ref[...], wx_ref[...], preferred_element_type=f32) + bx_ref[...])
    o_ref[...] = _gelu(y)


def dual_linear_gelu(hp_bf16, xp_bf16, wh, bh, wx, bx, tile):
    Rp, D = hp_bf16.shape
    return pl.pallas_call(
        _dual_linear_gelu_kernel,
        out_shape=jax.ShapeDtypeStruct((Rp, D), jnp.float32),
        grid=(Rp // tile,),
        in_specs=[pl.BlockSpec((tile, D), lambda i: (i, 0)),
                  pl.BlockSpec((tile, D), lambda i: (i, 0)),
                  pl.BlockSpec((D, D), lambda i: (0, 0)),
                  pl.BlockSpec((1, D), lambda i: (0, 0)),
                  pl.BlockSpec((D, D), lambda i: (0, 0)),
                  pl.BlockSpec((1, D), lambda i: (0, 0))],
        out_specs=pl.BlockSpec((tile, D), lambda i: (i, 0)),
        compiler_params=_CP1,
    )(hp_bf16, xp_bf16,
      wh.astype(jnp.bfloat16), bh.reshape(1, D).astype(jnp.float32),
      wx.astype(jnp.bfloat16), bx.reshape(1, D).astype(jnp.float32))


# ----------------------------- parameters ----------------------------------

def fold_bn(w, b, gamma, beta, rm, rv, eps=1e-5):
    """Fold eval-mode BatchNorm1d into the preceding Linear (exact)."""
    scale = gamma / jnp.sqrt(rv + eps)
    return w * scale[None, :], b * scale + (beta - rm * scale)


def init_params(key, n_ntype, n_etype, hidden, k, heads):
    keys = iter(jax.random.split(key, 64))

    def lin(fan_in, fan_out):
        s = 1.0 / math.sqrt(fan_in)
        w = jax.random.uniform(next(keys), (fan_in, fan_out), jnp.float32, -s, s)
        b = jax.random.uniform(next(keys), (fan_out,), jnp.float32, -s, s)
        return w, b

    p = {}
    p["ent_w"], p["ent_b"] = lin(n_ntype, hidden // 2)           # emb_node_type
    p["esc_w"], p["esc_b"] = lin(hidden // 2, hidden // 2)       # emb_score
    ee_in = n_etype + 1 + 2 * n_ntype
    p["ee1_w"], p["ee1_b"] = lin(ee_in, hidden)                  # edge_encoder[0]
    p["ee_bn_g"] = jnp.ones((hidden,), jnp.float32)
    p["ee_bn_b"] = jnp.zeros((hidden,), jnp.float32)
    p["ee_bn_rm"] = jnp.zeros((hidden,), jnp.float32)
    p["ee_bn_rv"] = jnp.ones((hidden,), jnp.float32)
    p["ee2_w"], p["ee2_b"] = lin(hidden, hidden)                 # edge_encoder[3]
    p["gnn"] = []
    for _ in range(k):
        lp = {}
        lp["wk"], lp["bk"] = lin(3 * hidden, hidden)             # linear_key
        lp["wm"], lp["bm"] = lin(3 * hidden, hidden)             # linear_msg
        lp["wq"], lp["bq"] = lin(2 * hidden, hidden)             # linear_query
        lp["m1_w"], lp["m1_b"] = lin(hidden, hidden)             # mlp[0]
        lp["bn_g"] = jnp.ones((hidden,), jnp.float32)
        lp["bn_b"] = jnp.zeros((hidden,), jnp.float32)
        lp["bn_rm"] = jnp.zeros((hidden,), jnp.float32)
        lp["bn_rv"] = jnp.ones((hidden,), jnp.float32)
        lp["m2_w"], lp["m2_b"] = lin(hidden, hidden)             # mlp[3]
        p["gnn"].append(lp)
    p["vh_w"], p["vh_b"] = lin(hidden, hidden)                   # Vh
    p["vx_w"], p["vx_b"] = lin(hidden, hidden)                   # Vx
    return p


# ----------------------------- forward pass --------------------------------

def qagnn_mp_forward(params, H, edge_index, edge_type, node_type, node_score,
                     n_ntype, n_etype, hidden, k, heads):
    Bsz, Nn, D = H.shape
    assert D == hidden and D % 2 == 0 and D % heads == 0 and heads <= 8
    N_tot = Bsz * Nn
    dph = D // heads
    f32, bf16 = jnp.float32, jnp.bfloat16
    SP = _round_up(heads, 8)                                     # score lane pad (8)

    TN = _pick_tile(N_tot)
    Np = _round_up(N_tot, TN)
    E = edge_index.shape[1]
    E_tot = E + N_tot                                            # incl. self loops
    TE = _pick_tile(E_tot)
    Ep = _round_up(E_tot, TE)
    pad_e = Ep - E_tot

    # --- node_feature_extra = [GELU(emb_node_type(T)) | GELU(emb_score(sin))]
    #     one fused linear+GELU via a block-diagonal combined weight ----------
    node_type_flat = node_type.reshape(-1)
    T_oh = jax.nn.one_hot(node_type_flat, n_ntype, dtype=f32)
    js = jnp.power(1.1, jnp.arange(D // 2, dtype=f32))
    Bsin = jnp.sin(js[None, :] * node_score.reshape(N_tot, 1))
    feat_node = jnp.concatenate([T_oh, Bsin], axis=1).astype(bf16)       # pre-cast
    W_nfe = jnp.zeros((n_ntype + D // 2, D), f32)
    W_nfe = W_nfe.at[:n_ntype, :D // 2].set(params["ent_w"])
    W_nfe = W_nfe.at[n_ntype:, D // 2:].set(params["esc_w"])
    b_nfe = jnp.concatenate([params["ent_b"], params["esc_b"]])
    nfe_b = linear_act(_pad_rows_to(feat_node, Np), W_nfe, b_nfe, "gelu", TN)  # (Np,D) bf16

    # --- edge bookkeeping: self loops, degree counts, padded gather indices ---
    loop = jnp.arange(N_tot, dtype=edge_index.dtype)
    src = jnp.concatenate([edge_index[0], loop])                 # (E_tot,)
    tgt = jnp.concatenate([edge_index[1], loop])
    src_g = jnp.concatenate([src, jnp.zeros((pad_e,), src.dtype)])
    tgt_g = jnp.concatenate([tgt, jnp.zeros((pad_e,), tgt.dtype)])
    counts = jax.ops.segment_sum(jnp.ones((E_tot,), f32), src, num_segments=N_tot)
    c_src = counts[src]                                          # (E_tot,)

    # --- edge embeddings (shared edge_encoder, fused into one kernel) --------
    edge_vec = jax.nn.one_hot(edge_type, n_etype + 1, dtype=f32)
    self_edge_vec = jnp.zeros((N_tot, n_etype + 1), f32).at[:, n_etype].set(1.0)
    head_vec = jax.nn.one_hot(node_type_flat[edge_index[0]], n_ntype, dtype=f32)
    tail_vec = jax.nn.one_hot(node_type_flat[edge_index[1]], n_ntype, dtype=f32)
    self_head = jax.nn.one_hot(node_type_flat, n_ntype, dtype=f32)
    edge_feat = jnp.concatenate(
        [jnp.concatenate([edge_vec, self_edge_vec], axis=0),
         jnp.concatenate([head_vec, self_head], axis=0),
         jnp.concatenate([tail_vec, self_head], axis=0)], axis=1).astype(bf16)
    w1, b1 = fold_bn(params["ee1_w"], params["ee1_b"], params["ee_bn_g"],
                     params["ee_bn_b"], params["ee_bn_rm"], params["ee_bn_rv"])
    ee_b = mlp2(_pad_rows_to(edge_feat, Ep), w1, b1,
                params["ee2_w"], params["ee2_b"], TE, out_act="none")    # (Ep,D) bf16

    # layer-invariant per-edge gathers of node_feature_extra
    # TODO(synk): src/tgt row gathers stay as XLA gathers; a scalar-prefetch
    #             pl.Element gather would remove these HBM materializations.
    Ni_b = nfe_b[tgt_g]                                          # x_i side (target)
    Nj_b = nfe_b[src_g]                                          # x_j side (source)

    # 0/1 head-selector matrix (bf16 exact), narrow SP=8 lane output
    head_id = jnp.arange(D, dtype=jnp.int32) // dph
    sel = (head_id[:, None] == jnp.arange(SP)[None, :]).astype(bf16)     # (D, SP)

    # --- k GAT layers ---------------------------------------------------------
    Xp_b = _pad_rows_to(H.reshape(N_tot, D).astype(bf16), Np)            # (Np,D) bf16
    for layer in range(k):
        lp = params["gnn"][layer]
        Xi_b = Xp_b[tgt_g]                                       # (Ep, D) bf16
        Xj_b = Xp_b[src_g]

        wk, wm, wq = lp["wk"], lp["wm"], lp["wq"]
        w_xi = wk[:D]
        w_ni = wk[D:2 * D]
        w_ee = jnp.concatenate([wk[2 * D:], wm[2 * D:]], axis=1)         # [key_ee|msg_ee]
        w_xj = jnp.concatenate([wm[:D], wq[:D]], axis=1)                 # [msg_x |qry_x ]
        w_nj = jnp.concatenate([wm[D:2 * D], wq[D:]], axis=1)            # [msg_n |qry_n ]

        scores_p, msg_p = gat_edge_scores_msg(
            Xi_b, Ni_b, Xj_b, Nj_b, ee_b,
            w_xi, w_ni, w_ee, w_xj, w_nj, lp["bk"], lp["bm"], lp["bq"],
            sel, TE, D, dph, SP)
        scores = scores_p[:E_tot, :heads]                        # (E_tot, heads) f32
        msg = msg_p[:E_tot]                                      # (E_tot, D) bf16

        # scatter-softmax grouped by source node + source-degree rescale (XLA)
        # TODO(synk): could move to sorted-edge PrefetchScalarGridSpec kernels.
        seg_max = jax.ops.segment_max(scores, src, num_segments=N_tot)
        a = jnp.exp(scores - seg_max[src])
        z = jax.ops.segment_sum(a, src, num_segments=N_tot)[src]
        w_alpha = a * (c_src[:, None] / z)                       # (E_tot, heads)

        # per-edge weighting + scatter-add to target nodes (O(E*D), no one-hot)
        weighted = jnp.repeat(w_alpha, dph, axis=1) * msg.astype(f32)
        aggr = jax.ops.segment_sum(weighted, tgt, num_segments=N_tot)    # (N,D) f32

        # per-layer MLP (Linear + folded BN + ReLU + Linear) + mp_helper GELU
        mw1, mb1 = fold_bn(lp["m1_w"], lp["m1_b"], lp["bn_g"], lp["bn_b"],
                           lp["bn_rm"], lp["bn_rv"])
        Xp_b = mlp2(_pad_rows_to(aggr.astype(bf16), Np), mw1, mb1,
                    lp["m2_w"], lp["m2_b"], TN, out_act="gelu")          # (Np,D) bf16
        # TODO(synk): F.dropout after each layer omitted (eval-mode identity).

    out_p = dual_linear_gelu(_pad_rows_to(H.reshape(N_tot, D).astype(bf16), Np),
                             Xp_b, params["vh_w"], params["vh_b"],
                             params["vx_w"], params["vx_b"], TN)
    # TODO(synk): final nn.Dropout omitted (eval-mode identity).
    return out_p[:N_tot].reshape(Bsz, Nn, D)


# --------------------------------- main -------------------------------------

if __name__ == "__main__":
    key = jax.random.PRNGKey(0)
    B, Nn, D = 2, 8, 128          # batch, nodes per graph, hidden size
    n_ntype, n_etype = 4, 6
    kgnn, heads = 2, 4
    E = 24

    keys = jax.random.split(key, 8)
    H = jax.random.normal(keys[0], (B, Nn, D), jnp.float32)
    edge_index = jax.random.randint(keys[1], (2, E), 0, B * Nn)
    edge_type = jax.random.randint(keys[2], (E,), 0, n_etype)
    node_type = jax.random.randint(keys[3], (B, Nn), 0, n_ntype)
    node_score = jax.random.normal(keys[4], (B, Nn, 1), jnp.float32)

    params = init_params(keys[5], n_ntype, n_etype, D, kgnn, heads)

    fwd = jax.jit(functools.partial(qagnn_mp_forward, n_ntype=n_ntype,
                                    n_etype=n_etype, hidden=D, k=kgnn,
                                    heads=heads))
    out = fwd(params, H, edge_index, edge_type, node_type, node_score)
    jax.block_until_ready(out)
    assert out.shape == (B, Nn, D)
    assert bool(jnp.all(jnp.isfinite(out)))
    print("KERNEL_OK")
</pallas_src>

<mosaic_0001>
module attributes {stable_mosaic.version = 11 : i64} {
  func.func private @main(%arg0: i32) attributes {dimension_semantics = [#tpu.dimension_semantics<core_parallel>], iteration_bounds = array<i64: 2>, tpu.core_type = #tpu.core_type<sc_scalar_subcore>, window_params = []} {
    return
  }
}

module attributes {stable_mosaic.version = 11 : i64} {
  func.func private @main(%arg0: i32) attributes {dimension_semantics = [#tpu.dimension_semantics<core_parallel>], iteration_bounds = array<i64: 2>, tpu.core_type = #tpu.core_type<sc_scalar_subcore>, window_params = []} {
    return
  }
}

module attributes {stable_mosaic.version = 11 : i64} {
  func.func @_linear_act_kernel(%arg0: i32, %arg1: memref<16x68xbf16, #tpu.memory_space<vmem>>, %arg2: memref<68x128xbf16, #tpu.memory_space<vmem>>, %arg3: memref<1x128xf32, #tpu.memory_space<vmem>>, %arg4: memref<16x128xbf16, #tpu.memory_space<vmem>>) attributes {dimension_semantics = [#tpu.dimension_semantics<parallel>], iteration_bounds = array<i64: 1>, scalar_prefetch = 0 : i64, scratch_operands = 0 : i64, tpu.core_type = #tpu.core_type<tc>, window_params = [{transform_indices = @transform_0, window_bounds = array<i64: 16, 68>}, {pipeline_mode = #tpu.pipeline_mode<synchronous>, transform_indices = @transform_1, window_bounds = array<i64: 68, 128>}, {pipeline_mode = #tpu.pipeline_mode<synchronous>, transform_indices = @transform_2, window_bounds = array<i64: 1, 128>}, {transform_indices = @transform_3, window_bounds = array<i64: 16, 128>}]} {
    %c0 = arith.constant 0 : index
    %c0_0 = arith.constant 0 : index
    %0 = vector.load %arg1[%c0, %c0_0] : memref<16x68xbf16, #tpu.memory_space<vmem>>, vector<16x68xbf16>
    %c0_1 = arith.constant 0 : index
    %c0_2 = arith.constant 0 : index
    %1 = vector.load %arg2[%c0_1, %c0_2] : memref<68x128xbf16, #tpu.memory_space<vmem>>, vector<68x128xbf16>
    %cst = arith.constant dense<0.000000e+00> : vector<16x128xf32>
    %2 = tpu.matmul %0, %1, %cst {dimension_numbers = #tpu.dot_dimension_numbers<[1], [0], [0], [1], [0, 0, 1, 1], [], []>} : vector<16x68xbf16>, vector<68x128xbf16>, vector<16x128xf32> -> vector<16x128xf32>
    %c0_3 = arith.constant 0 : index
    %c0_4 = arith.constant 0 : index
    %3 = vector.load %arg3[%c0_3, %c0_4] : memref<1x128xf32, #tpu.memory_space<vmem>>, vector<1x128xf32>
    %4 = vector.broadcast %3 : vector<1x128xf32> to vector<16x128xf32>
    %5 = arith.addf %2, %4 : vector<16x128xf32>
    %cst_5 = arith.constant 5.000000e-01 : f32
    %6 = vector.broadcast %cst_5 : f32 to vector<16x128xf32>
    %7 = arith.mulf %6, %5 : vector<16x128xf32>
    %cst_6 = arith.constant 4.471500e-02 : f32
    %8 = vector.broadcast %cst_6 : f32 to vector<16x128xf32>
    %9 = arith.mulf %8, %5 : vector<16x128xf32>
    %10 = arith.mulf %9, %5 : vector<16x128xf32>
    %11 = arith.mulf %10, %5 : vector<16x128xf32>
    %12 = arith.addf %5, %11 : vector<16x128xf32>
    %cst_7 = arith.constant 0.797884583 : f32
    %13 = vector.broadcast %cst_7 : f32 to vector<16x128xf32>
    %14 = arith.mulf %13, %12 : vector<16x128xf32>
    %15 = math.tanh %14 : vector<16x128xf32>
    %cst_8 = arith.constant 1.000000e+00 : f32
    %16 = vector.broadcast %cst_8 : f32 to vector<16x128xf32>
    %17 = arith.addf %16, %15 : vector<16x128xf32>
    %18 = arith.mulf %7, %17 : vector<16x128xf32>
    %19 = arith.truncf %18 : vector<16x128xf32> to vector<16x128xbf16>
    %c0_9 = arith.constant 0 : index
    %c0_10 = arith.constant 0 : index
    %20 = vector.load %arg4[%c0_9, %c0_10] : memref<16x128xbf16, #tpu.memory_space<vmem>>, vector<16x128xbf16>
    tpu.vector_store %arg4[%c0_9, %c0_10], %19 {strides = array<i32>} : memref<16x128xbf16, #tpu.memory_space<vmem>>, vector<16x128xbf16>,
    return
  }
  func.func @transform_0(%arg0: i32) -> (i32, i32) {
    %c0_i32 = arith.constant 0 : i32
    %c0_i32_0 = arith.constant 0 : i32
    return %arg0, %c0_i32 : i32, i32
  }
  func.func @transform_1(%arg0: i32) -> (i32, i32) {
    %c0_i32 = arith.constant 0 : i32
    %c0_i32_0 = arith.constant 0 : i32
    %c0_i32_1 = arith.constant 0 : i32
    return %c0_i32, %c0_i32_0 : i32, i32
  }
  func.func @transform_2(%arg0: i32) -> (i32, i32) {
    %c0_i32 = arith.constant 0 : i32
    %c0_i32_0 = arith.constant 0 : i32
    %c0_i32_1 = arith.constant 0 : i32
    return %c0_i32, %c0_i32_0 : i32, i32
  }
  func.func @transform_3(%arg0: i32) -> (i32, i32) {
    %c0_i32 = arith.constant 0 : i32
    %c0_i32_0 = arith.constant 0 : i32
    return %arg0, %c0_i32 : i32, i32
  }
}

module attributes {stable_mosaic.version = 11 : i64} {
  func.func @_gat_edge_kernel(%arg0: i32, %arg1: memref<32x128xbf16, #tpu.memory_space<vmem>>, %arg2: memref<32x128xbf16, #tpu.memory_space<vmem>>, %arg3: memref<32x128xbf16, #tpu.memory_space<vmem>>, %arg4: memref<32x128xbf16, #tpu.memory_space<vmem>>, %arg5: memref<32x128xbf16, #tpu.memory_space<vmem>>, %arg6: memref<128x128xbf16, #tpu.memory_space<vmem>>, %arg7: memref<128x128xbf16, #tpu.memory_space<vmem>>, %arg8: memref<128x256xbf16, #tpu.memory_space<vmem>>, %arg9: memref<128x256xbf16, #tpu.memory_space<vmem>>, %arg10: memref<128x256xbf16, #tpu.memory_space<vmem>>, %arg11: memref<1x128xf32, #tpu.memory_space<vmem>>, %arg12: memref<1x128xf32, #tpu.memory_space<vmem>>, %arg13: memref<1x128xf32, #tpu.memory_space<vmem>>, %arg14: memref<128x8xbf16, #tpu.memory_space<vmem>>, %arg15: memref<32x8xf32, #tpu.memory_space<vmem>>, %arg16: memref<32x128xbf16, #tpu.memory_space<vmem>>) attributes {dimension_semantics = [#tpu.dimension_semantics<parallel>], iteration_bounds = array<i64: 2>, scalar_prefetch = 0 : i64, scratch_operands = 0 : i64, tpu.core_type = #tpu.core_type<tc>, window_params = [{transform_indices = @transform_0, window_bounds = array<i64: 32, 128>}, {transform_indices = @transform_1, window_bounds = array<i64: 32, 128>}, {transform_indices = @transform_2, window_bounds = array<i64: 32, 128>}, {transform_indices = @transform_3, window_bounds = array<i64: 32, 128>}, {transform_indices = @transform_4, window_bounds = array<i64: 32, 128>}, {pipeline_mode = #tpu.pipeline_mode<synchronous>, transform_indices = @transform_5, window_bounds = array<i64: 128, 128>}, {pipeline_mode = #tpu.pipeline_mode<synchronous>, transform_indices = @transform_6, window_bounds = array<i64: 128, 128>}, {pipeline_mode = #tpu.pipeline_mode<synchronous>, transform_indices = @transform_7, window_bounds = array<i64: 128, 256>}, {pipeline_mode = #tpu.pipeline_mode<synchronous>, transform_indices = @transform_8, window_bounds = array<i64: 128, 256>}, {pipeline_mode = #tpu.pipeline_mode<synchronous>, transform_indices = @transform_9, window_bounds = array<i64: 128, 256>}, {pipeline_mode = #tpu.pipeline_mode<synchronous>, transform_indices = @transform_10, window_bounds = array<i64: 1, 128>}, {pipeline_mode = #tpu.pipeline_mode<synchronous>, transform_indices = @transform_11, window_bounds = array<i64: 1, 128>}, {pipeline_mode = #tpu.pipeline_mode<synchronous>, transform_indices = @transform_12, window_bounds = array<i64: 1, 128>}, {pipeline_mode = #tpu.pipeline_mode<synchronous>, transform_indices = @transform_13, window_bounds = array<i64: 128, 8>}, {transform_indices = @transform_14, window_bounds = array<i64: 32, 8>}, {transform_indices = @transform_15, window_bounds = array<i64: 32, 128>}]} {
    %c0 = arith.constant 0 : index
    %c0_0 = arith.constant 0 : index
    %0 = vector.load %arg5[%c0, %c0_0] : memref<32x128xbf16, #tpu.memory_space<vmem>>, vector<32x128xbf16>
    %c0_1 = arith.constant 0 : index
    %c0_2 = arith.constant 0 : index
    %1 = vector.load %arg8[%c0_1, %c0_2] : memref<128x256xbf16, #tpu.memory_space<vmem>>, vector<128x256xbf16>
    %cst = arith.constant dense<0.000000e+00> : vector<32x256xf32>
    %2 = tpu.matmul %0, %1, %cst {dimension_numbers = #tpu.dot_dimension_numbers<[1], [0], [0], [1], [0, 0, 1, 1], [], []>} : vector<32x128xbf16>, vector<128x256xbf16>, vector<32x256xf32> -> vector<32x256xf32>
    %c0_3 = arith.constant 0 : index
    %c0_4 = arith.constant 0 : index
    %3 = vector.load %arg3[%c0_3, %c0_4] : memref<32x128xbf16, #tpu.memory_space<vmem>>, vector<32x128xbf16>
    %c0_5 = arith.constant 0 : index
    %c0_6 = arith.constant 0 : index
    %4 = vector.load %arg9[%c0_5, %c0_6] : memref<128x256xbf16, #tpu.memory_space<vmem>>, vector<128x256xbf16>
    %cst_7 = arith.constant dense<0.000000e+00> : vector<32x256xf32>
    %5 = tpu.matmul %3, %4, %cst_7 {dimension_numbers = #tpu.dot_dimension_numbers<[1], [0], [0], [1], [0, 0, 1, 1], [], []>} : vector<32x128xbf16>, vector<128x256xbf16>, vector<32x256xf32> -> vector<32x256xf32>
    %c0_8 = arith.constant 0 : index
    %c0_9 = arith.constant 0 : index
    %6 = vector.load %arg4[%c0_8, %c0_9] : memref<32x128xbf16, #tpu.memory_space<vmem>>, vector<32x128xbf16>
    %c0_10 = arith.constant 0 : index
    %c0_11 = arith.constant 0 : index
    %7 = vector.load %arg10[%c0_10, %c0_11] : memref<128x256xbf16, #tpu.memory_space<vmem>>, vector<128x256xbf16>
    %cst_12 = arith.constant dense<0.000000e+00> : vector<32x256xf32>
    %8 = tpu.matmul %6, %7, %cst_12 {dimension_numbers = #tpu.dot_dimension_numbers<[1], [0], [0], [1], [0, 0, 1, 1], [], []>} : vector<32x128xbf16>, vector<128x256xbf16>, vector<32x256xf32> -> vector<32x256xf32>
    %c0_13 = arith.constant 0 : index
    %c0_14 = arith.constant 0 : index
    %9 = vector.load %arg1[%c0_13, %c0_14] : memref<32x128xbf16, #tpu.memory_space<vmem>>, vector<32x128xbf16>
    %c0_15 = arith.constant 0 : index
    %c0_16 = arith.constant 0 : index
    %10 = vector.load %arg6[%c0_15, %c0_16] : memref<128x128xbf16, #tpu.memory_space<vmem>>, vector<128x128xbf16>
    %cst_17 = arith.constant dense<0.000000e+00> : vector<32x128xf32>
    %11 = tpu.matmul %9, %10, %cst_17 {dimension_numbers = #tpu.dot_dimension_numbers<[1], [0], [0], [1], [0, 0, 1, 1], [], []>} : vector<32x128xbf16>, vector<128x128xbf16>, vector<32x128xf32> -> vector<32x128xf32>
    %c0_18 = arith.constant 0 : index
    %c0_19 = arith.constant 0 : index
    %12 = vector.load %arg2[%c0_18, %c0_19] : memref<32x128xbf16, #tpu.memory_space<vmem>>, vector<32x128xbf16>
    %c0_20 = arith.constant 0 : index
    %c0_21 = arith.constant 0 : index
    %13 = vector.load %arg7[%c0_20, %c0_21] : memref<128x128xbf16, #tpu.memory_space<vmem>>, vector<128x128xbf16>
    %cst_22 = arith.constant dense<0.000000e+00> : vector<32x128xf32>
    %14 = tpu.matmul %12, %13, %cst_22 {dimension_numbers = #tpu.dot_dimension_numbers<[1], [0], [0], [1], [0, 0, 1, 1], [], []>} : vector<32x128xbf16>, vector<128x128xbf16>, vector<32x128xf32> -> vector<32x128xf32>
    %15 = arith.addf %11, %14 : vector<32x128xf32>
    %16 = vector.extract_strided_slice %2 {offsets = [0, 0], sizes = [32, 128], strides = [1, 1]} : vector<32x256xf32> to vector<32x128xf32>
    %17 = arith.addf %15, %16 : vector<32x128xf32>
    %c0_23 = arith.constant 0 : index
    %c0_24 = arith.constant 0 : index
    %18 = vector.load %arg11[%c0_23, %c0_24] : memref<1x128xf32, #tpu.memory_space<vmem>>, vector<1x128xf32>
    %19 = vector.broadcast %18 : vector<1x128xf32> to vector<32x128xf32>
    %20 = arith.addf %17, %19 : vector<32x128xf32>
    %21 = vector.extract_strided_slice %5 {offsets = [0, 0], sizes = [32, 128], strides = [1, 1]} : vector<32x256xf32> to vector<32x128xf32>
    %22 = vector.extract_strided_slice %8 {offsets = [0, 0], sizes = [32, 128], strides = [1, 1]} : vector<32x256xf32> to vector<32x128xf32>
    %23 = arith.addf %21, %22 : vector<32x128xf32>
    %24 = vector.extract_strided_slice %2 {offsets = [0, 128], sizes = [32, 128], strides = [1, 1]} : vector<32x256xf32> to vector<32x128xf32>
    %25 = arith.addf %23, %24 : vector<32x128xf32>
    %c0_25 = arith.constant 0 : index
    %c0_26 = arith.constant 0 : index
    %26 = vector.load %arg12[%c0_25, %c0_26] : memref<1x128xf32, #tpu.memory_space<vmem>>, vector<1x128xf32>
    %27 = vector.broadcast %26 : vector<1x128xf32> to vector<32x128xf32>
    %28 = arith.addf %25, %27 : vector<32x128xf32>
    %29 = vector.extract_strided_slice %5 {offsets = [0, 128], sizes = [32, 128], strides = [1, 1]} : vector<32x256xf32> to vector<32x128xf32>
    %30 = vector.extract_strided_slice %8 {offsets = [0, 128], sizes = [32, 128], strides = [1, 1]} : vector<32x256xf32> to vector<32x128xf32>
    %31 = arith.addf %29, %30 : vector<32x128xf32>
    %c0_27 = arith.constant 0 : index
    %c0_28 = arith.constant 0 : index
    %32 = vector.load %arg13[%c0_27, %c0_28] : memref<1x128xf32, #tpu.memory_space<vmem>>, vector<1x128xf32>
    %33 = vector.broadcast %32 : vector<1x128xf32> to vector<32x128xf32>
    %34 = arith.addf %31, %33 : vector<32x128xf32>
    %cst_29 = arith.constant 0.176776692 : f32
    %35 = vector.broadcast %cst_29 : f32 to vector<32x128xf32>
    %36 = arith.mulf %34, %35 : vector<32x128xf32>
    %37 = arith.mulf %36, %20 : vector<32x128xf32>
    %38 = arith.truncf %37 : vector<32x128xf32> to vector<32x128xbf16>
    %c0_30 = arith.constant 0 : index
    %c0_31 = arith.constant 0 : index
    %39 = vector.load %arg14[%c0_30, %c0_31] : memref<128x8xbf16, #tpu.memory_space<vmem>>, vector<128x8xbf16>
    %cst_32 = arith.constant dense<0.000000e+00> : vector<32x8xf32>
    %40 = tpu.matmul %38, %39, %cst_32 {dimension_numbers = #tpu.dot_dimension_numbers<[1], [0], [0], [1], [0, 0, 1, 1], [], []>} : vector<32x128xbf16>, vector<128x8xbf16>, vector<32x8xf32> -> vector<32x8xf32>
    %c0_33 = arith.constant 0 : index
    %c0_34 = arith.constant 0 : index
    %41 = vector.load %arg15[%c0_33, %c0_34] : memref<32x8xf32, #tpu.memory_space<vmem>>, vector<32x8xf32>
    tpu.vector_store %arg15[%c0_33, %c0_34], %40 {strides = array<i32>} : memref<32x8xf32, #tpu.memory_space<vmem>>, vector<32x8xf32>,
    %42 = arith.truncf %28 : vector<32x128xf32> to vector<32x128xbf16>
    %c0_35 = arith.constant 0 : index
    %c0_36 = arith.constant 0 : index
    %43 = vector.load %arg16[%c0_35, %c0_36] : memref<32x128xbf16, #tpu.memory_space<vmem>>, vector<32x128xbf16>
    tpu.vector_store %arg16[%c0_35, %c0_36], %42 {strides = array<i32>} : memref<32x128xbf16, #tpu.memory_space<vmem>>, vector<32x128xbf16>,
    return
  }
  func.func @transform_0(%arg0: i32) -> (i32, i32) {
    %c0_i32 = arith.constant 0 : i32
    %c0_i32_0 = arith.constant 0 : i32
    return %arg0, %c0_i32 : i32, i32
  }
  func.func @transform_1(%arg0: i32) -> (i32, i32) {
    %c0_i32 = arith.constant 0 : i32
    %c0_i32_0 = arith.constant 0 : i32
    return %arg0, %c0_i32 : i32, i32
  }
  func.func @transform_2(%arg0: i32) -> (i32, i32) {
    %c0_i32 = arith.constant 0 : i32
    %c0_i32_0 = arith.constant 0 : i32
    return %arg0, %c0_i32 : i32, i32
  }
  func.func @transform_3(%arg0: i32) -> (i32, i32) {
    %c0_i32 = arith.constant 0 : i32
    %c0_i32_0 = arith.constant 0 : i32
    return %arg0, %c0_i32 : i32, i32
  }
  func.func @transform_4(%arg0: i32) -> (i32, i32) {
    %c0_i32 = arith.constant 0 : i32
    %c0_i32_0 = arith.constant 0 : i32
    return %arg0, %c0_i32 : i32, i32
  }
  func.func @transform_5(%arg0: i32) -> (i32, i32) {
    %c0_i32 = arith.constant 0 : i32
    %c0_i32_0 = arith.constant 0 : i32
    %c0_i32_1 = arith.constant 0 : i32
    return %c0_i32, %c0_i32_0 : i32, i32
  }
  func.func @transform_6(%arg0: i32) -> (i32, i32) {
    %c0_i32 = arith.constant 0 : i32
    %c0_i32_0 = arith.constant 0 : i32
    %c0_i32_1 = arith.constant 0 : i32
    return %c0_i32, %c0_i32_0 : i32, i32
  }
  func.func @transform_7(%arg0: i32) -> (i32, i32) {
    %c0_i32 = arith.constant 0 : i32
    %c0_i32_0 = arith.constant 0 : i32
    %c0_i32_1 = arith.constant 0 : i32
    return %c0_i32, %c0_i32_0 : i32, i32
  }
  func.func @transform_8(%arg0: i32) -> (i32, i32) {
    %c0_i32 = arith.constant 0 : i32
    %c0_i32_0 = arith.constant 0 : i32
    %c0_i32_1 = arith.constant 0 : i32
    return %c0_i32, %c0_i32_0 : i32, i32
  }
  func.func @transform_9(%arg0: i32) -> (i32, i32) {
    %c0_i32 = arith.constant 0 : i32
    %c0_i32_0 = arith.constant 0 : i32
    %c0_i32_1 = arith.constant 0 : i32
    return %c0_i32, %c0_i32_0 : i32, i32
  }
  func.func @transform_10(%arg0: i32) -> (i32, i32) {
    %c0_i32 = arith.constant 0 : i32
    %c0_i32_0 = arith.constant 0 : i32
    %c0_i32_1 = arith.constant 0 : i32
    return %c0_i32, %c0_i32_0 : i32, i32
  }
  func.func @transform_11(%arg0: i32) -> (i32, i32) {
    %c0_i32 = arith.constant 0 : i32
    %c0_i32_0 = arith.constant 0 : i32
    %c0_i32_1 = arith.constant 0 : i32
    return %c0_i32, %c0_i32_0 : i32, i32
  }
  func.func @transform_12(%arg0: i32) -> (i32, i32) {
    %c0_i32 = arith.constant 0 : i32
    %c0_i32_0 = arith.constant 0 : i32
    %c0_i32_1 = arith.constant 0 : i32
    return %c0_i32, %c0_i32_0 : i32, i32
  }
  func.func @transform_13(%arg0: i32) -> (i32, i32) {
    %c0_i32 = arith.constant 0 : i32
    %c0_i32_0 = arith.constant 0 : i32
    %c0_i32_1 = arith.constant 0 : i32
    return %c0_i32, %c0_i32_0 : i32, i32
  }
  func.func @transform_14(%arg0: i32) -> (i32, i32) {
    %c0_i32 = arith.constant 0 : i32
    %c0_i32_0 = arith.constant 0 : i32
    return %arg0, %c0_i32 : i32, i32
  }
  func.func @transform_15(%arg0: i32) -> (i32, i32) {
    %c0_i32 = arith.constant 0 : i32
    %c0_i32_0 = arith.constant 0 : i32
    return %arg0, %c0_i32 : i32, i32
  }
}

module attributes {stable_mosaic.version = 11 : i64} {
  func.func @_mlp2_kernel(%arg0: i32, %arg1: memref<32x15xbf16, #tpu.memory_space<vmem>>, %arg2: memref<15x128xbf16, #tpu.memory_space<vmem>>, %arg3: memref<1x128xf32, #tpu.memory_space<vmem>>, %arg4: memref<128x128xbf16, #tpu.memory_space<vmem>>, %arg5: memref<1x128xf32, #tpu.memory_space<vmem>>, %arg6: memref<32x128xbf16, #tpu.memory_space<vmem>>) attributes {dimension_semantics = [#tpu.dimension_semantics<parallel>], iteration_bounds = array<i64: 2>, scalar_prefetch = 0 : i64, scratch_operands = 0 : i64, tpu.core_type = #tpu.core_type<tc>, window_params = [{transform_indices = @transform_0, window_bounds = array<i64: 32, 15>}, {pipeline_mode = #tpu.pipeline_mode<synchronous>, transform_indices = @transform_1, window_bounds = array<i64: 15, 128>}, {pipeline_mode = #tpu.pipeline_mode<synchronous>, transform_indices = @transform_2, window_bounds = array<i64: 1, 128>}, {pipeline_mode = #tpu.pipeline_mode<synchronous>, transform_indices = @transform_3, window_bounds = array<i64: 128, 128>}, {pipeline_mode = #tpu.pipeline_mode<synchronous>, transform_indices = @transform_4, window_bounds = array<i64: 1, 128>}, {transform_indices = @transform_5, window_bounds = array<i64: 32, 128>}]} {
    %c0 = arith.constant 0 : index
    %c0_0 = arith.constant 0 : index
    %0 = vector.load %arg1[%c0, %c0_0] : memref<32x15xbf16, #tpu.memory_space<vmem>>, vector<32x15xbf16>
    %c0_1 = arith.constant 0 : index
    %c0_2 = arith.constant 0 : index
    %1 = vector.load %arg2[%c0_1, %c0_2] : memref<15x128xbf16, #tpu.memory_space<vmem>>, vector<15x128xbf16>
    %cst = arith.constant dense<0.000000e+00> : vector<32x128xf32>
    %2 = tpu.matmul %0, %1, %cst {dimension_numbers = #tpu.dot_dimension_numbers<[1], [0], [0], [1], [0, 0, 1, 1], [], []>} : vector<32x15xbf16>, vector<15x128xbf16>, vector<32x128xf32> -> vector<32x128xf32>
    %c0_3 = arith.constant 0 : index
    %c0_4 = arith.constant 0 : index
    %3 = vector.load %arg3[%c0_3, %c0_4] : memref<1x128xf32, #tpu.memory_space<vmem>>, vector<1x128xf32>
    %4 = vector.broadcast %3 : vector<1x128xf32> to vector<32x128xf32>
    %5 = arith.addf %2, %4 : vector<32x128xf32>
    %cst_5 = arith.constant 0.000000e+00 : f32
    %6 = vector.broadcast %cst_5 : f32 to vector<32x128xf32>
    %7 = arith.maximumf %5, %6 : vector<32x128xf32>
    %8 = arith.truncf %7 : vector<32x128xf32> to vector<32x128xbf16>
    %c0_6 = arith.constant 0 : index
    %c0_7 = arith.constant 0 : index
    %9 = vector.load %arg4[%c0_6, %c0_7] : memref<128x128xbf16, #tpu.memory_space<vmem>>, vector<128x128xbf16>
    %cst_8 = arith.constant dense<0.000000e+00> : vector<32x128xf32>
    %10 = tpu.matmul %8, %9, %cst_8 {dimension_numbers = #tpu.dot_dimension_numbers<[1], [0], [0], [1], [0, 0, 1, 1], [], []>} : vector<32x128xbf16>, vector<128x128xbf16>, vector<32x128xf32> -> vector<32x128xf32>
    %c0_9 = arith.constant 0 : index
    %c0_10 = arith.constant 0 : index
    %11 = vector.load %arg5[%c0_9, %c0_10] : memref<1x128xf32, #tpu.memory_space<vmem>>, vector<1x128xf32>
    %12 = vector.broadcast %11 : vector<1x128xf32> to vector<32x128xf32>
    %13 = arith.addf %10, %12 : vector<32x128xf32>
    %14 = arith.truncf %13 : vector<32x128xf32> to vector<32x128xbf16>
    %c0_11 = arith.constant 0 : index
    %c0_12 = arith.constant 0 : index
    %15 = vector.load %arg6[%c0_11, %c0_12] : memref<32x128xbf16, #tpu.memory_space<vmem>>, vector<32x128xbf16>
    tpu.vector_store %arg6[%c0_11, %c0_12], %14 {strides = array<i32>} : memref<32x128xbf16, #tpu.memory_space<vmem>>, vector<32x128xbf16>,
    return
  }
  func.func @transform_0(%arg0: i32) -> (i32, i32) {
    %c0_i32 = arith.constant 0 : i32
    %c0_i32_0 = arith.constant 0 : i32
    return %arg0, %c0_i32 : i32, i32
  }
  func.func @transform_1(%arg0: i32) -> (i32, i32) {
    %c0_i32 = arith.constant 0 : i32
    %c0_i32_0 = arith.constant 0 : i32
    %c0_i32_1 = arith.constant 0 : i32
    return %c0_i32, %c0_i32_0 : i32, i32
  }
  func.func @transform_2(%arg0: i32) -> (i32, i32) {
    %c0_i32 = arith.constant 0 : i32
    %c0_i32_0 = arith.constant 0 : i32
    %c0_i32_1 = arith.constant 0 : i32
    return %c0_i32, %c0_i32_0 : i32, i32
  }
  func.func @transform_3(%arg0: i32) -> (i32, i32) {
    %c0_i32 = arith.constant 0 : i32
    %c0_i32_0 = arith.constant 0 : i32
    %c0_i32_1 = arith.constant 0 : i32
    return %c0_i32, %c0_i32_0 : i32, i32
  }
  func.func @transform_4(%arg0: i32) -> (i32, i32) {
    %c0_i32 = arith.constant 0 : i32
    %c0_i32_0 = arith.constant 0 : i32
    %c0_i32_1 = arith.constant 0 : i32
    return %c0_i32, %c0_i32_0 : i32, i32
  }
  func.func @transform_5(%arg0: i32) -> (i32, i32) {
    %c0_i32 = arith.constant 0 : i32
    %c0_i32_0 = arith.constant 0 : i32
    return %arg0, %c0_i32 : i32, i32
  }
}

module attributes {stable_mosaic.version = 11 : i64} {
  func.func @_mlp2_kernel(%arg0: i32, %arg1: memref<16x128xbf16, #tpu.memory_space<vmem>>, %arg2: memref<128x128xbf16, #tpu.memory_space<vmem>>, %arg3: memref<1x128xf32, #tpu.memory_space<vmem>>, %arg4: memref<128x128xbf16, #tpu.memory_space<vmem>>, %arg5: memref<1x128xf32, #tpu.memory_space<vmem>>, %arg6: memref<16x128xbf16, #tpu.memory_space<vmem>>) attributes {dimension_semantics = [#tpu.dimension_semantics<parallel>], iteration_bounds = array<i64: 1>, scalar_prefetch = 0 : i64, scratch_operands = 0 : i64, tpu.core_type = #tpu.core_type<tc>, window_params = [{transform_indices = @transform_0, window_bounds = array<i64: 16, 128>}, {pipeline_mode = #tpu.pipeline_mode<synchronous>, transform_indices = @transform_1, window_bounds = array<i64: 128, 128>}, {pipeline_mode = #tpu.pipeline_mode<synchronous>, transform_indices = @transform_2, window_bounds = array<i64: 1, 128>}, {pipeline_mode = #tpu.pipeline_mode<synchronous>, transform_indices = @transform_3, window_bounds = array<i64: 128, 128>}, {pipeline_mode = #tpu.pipeline_mode<synchronous>, transform_indices = @transform_4, window_bounds = array<i64: 1, 128>}, {transform_indices = @transform_5, window_bounds = array<i64: 16, 128>}]} {
    %c0 = arith.constant 0 : index
    %c0_0 = arith.constant 0 : index
    %0 = vector.load %arg1[%c0, %c0_0] : memref<16x128xbf16, #tpu.memory_space<vmem>>, vector<16x128xbf16>
    %c0_1 = arith.constant 0 : index
    %c0_2 = arith.constant 0 : index
    %1 = vector.load %arg2[%c0_1, %c0_2] : memref<128x128xbf16, #tpu.memory_space<vmem>>, vector<128x128xbf16>
    %cst = arith.constant dense<0.000000e+00> : vector<16x128xf32>
    %2 = tpu.matmul %0, %1, %cst {dimension_numbers = #tpu.dot_dimension_numbers<[1], [0], [0], [1], [0, 0, 1, 1], [], []>} : vector<16x128xbf16>, vector<128x128xbf16>, vector<16x128xf32> -> vector<16x128xf32>
    %c0_3 = arith.constant 0 : index
    %c0_4 = arith.constant 0 : index
    %3 = vector.load %arg3[%c0_3, %c0_4] : memref<1x128xf32, #tpu.memory_space<vmem>>, vector<1x128xf32>
    %4 = vector.broadcast %3 : vector<1x128xf32> to vector<16x128xf32>
    %5 = arith.addf %2, %4 : vector<16x128xf32>
    %cst_5 = arith.constant 0.000000e+00 : f32
    %6 = vector.broadcast %cst_5 : f32 to vector<16x128xf32>
    %7 = arith.maximumf %5, %6 : vector<16x128xf32>
    %8 = arith.truncf %7 : vector<16x128xf32> to vector<16x128xbf16>
    %c0_6 = arith.constant 0 : index
    %c0_7 = arith.constant 0 : index
    %9 = vector.load %arg4[%c0_6, %c0_7] : memref<128x128xbf16, #tpu.memory_space<vmem>>, vector<128x128xbf16>
    %cst_8 = arith.constant dense<0.000000e+00> : vector<16x128xf32>
    %10 = tpu.matmul %8, %9, %cst_8 {dimension_numbers = #tpu.dot_dimension_numbers<[1], [0], [0], [1], [0, 0, 1, 1], [], []>} : vector<16x128xbf16>, vector<128x128xbf16>, vector<16x128xf32> -> vector<16x128xf32>
    %c0_9 = arith.constant 0 : index
    %c0_10 = arith.constant 0 : index
    %11 = vector.load %arg5[%c0_9, %c0_10] : memref<1x128xf32, #tpu.memory_space<vmem>>, vector<1x128xf32>
    %12 = vector.broadcast %11 : vector<1x128xf32> to vector<16x128xf32>
    %13 = arith.addf %10, %12 : vector<16x128xf32>
    %cst_11 = arith.constant 5.000000e-01 : f32
    %14 = vector.broadcast %cst_11 : f32 to vector<16x128xf32>
    %15 = arith.mulf %14, %13 : vector<16x128xf32>
    %cst_12 = arith.constant 4.471500e-02 : f32
    %16 = vector.broadcast %cst_12 : f32 to vector<16x128xf32>
    %17 = arith.mulf %16, %13 : vector<16x128xf32>
    %18 = arith.mulf %17, %13 : vector<16x128xf32>
    %19 = arith.mulf %18, %13 : vector<16x128xf32>
    %20 = arith.addf %13, %19 : vector<16x128xf32>
    %cst_13 = arith.constant 0.797884583 : f32
    %21 = vector.broadcast %cst_13 : f32 to vector<16x128xf32>
    %22 = arith.mulf %21, %20 : vector<16x128xf32>
    %23 = math.tanh %22 : vector<16x128xf32>
    %cst_14 = arith.constant 1.000000e+00 : f32
    %24 = vector.broadcast %cst_14 : f32 to vector<16x128xf32>
    %25 = arith.addf %24, %23 : vector<16x128xf32>
    %26 = arith.mulf %15, %25 : vector<16x128xf32>
    %27 = arith.truncf %26 : vector<16x128xf32> to vector<16x128xbf16>
    %c0_15 = arith.constant 0 : index
    %c0_16 = arith.constant 0 : index
    %28 = vector.load %arg6[%c0_15, %c0_16] : memref<16x128xbf16, #tpu.memory_space<vmem>>, vector<16x128xbf16>
    tpu.vector_store %arg6[%c0_15, %c0_16], %27 {strides = array<i32>} : memref<16x128xbf16, #tpu.memory_space<vmem>>, vector<16x128xbf16>,
    return
  }
  func.func @transform_0(%arg0: i32) -> (i32, i32) {
    %c0_i32 = arith.constant 0 : i32
    %c0_i32_0 = arith.constant 0 : i32
    return %arg0, %c0_i32 : i32, i32
  }
  func.func @transform_1(%arg0: i32) -> (i32, i32) {
    %c0_i32 = arith.constant 0 : i32
    %c0_i32_0 = arith.constant 0 : i32
    %c0_i32_1 = arith.constant 0 : i32
    return %c0_i32, %c0_i32_0 : i32, i32
  }
  func.func @transform_2(%arg0: i32) -> (i32, i32) {
    %c0_i32 = arith.constant 0 : i32
    %c0_i32_0 = arith.constant 0 : i32
    %c0_i32_1 = arith.constant 0 : i32
    return %c0_i32, %c0_i32_0 : i32, i32
  }
  func.func @transform_3(%arg0: i32) -> (i32, i32) {
    %c0_i32 = arith.constant 0 : i32
    %c0_i32_0 = arith.constant 0 : i32
    %c0_i32_1 = arith.constant 0 : i32
    return %c0_i32, %c0_i32_0 : i32, i32
  }
  func.func @transform_4(%arg0: i32) -> (i32, i32) {
    %c0_i32 = arith.constant 0 : i32
    %c0_i32_0 = arith.constant 0 : i32
    %c0_i32_1 = arith.constant 0 : i32
    return %c0_i32, %c0_i32_0 : i32, i32
  }
  func.func @transform_5(%arg0: i32) -> (i32, i32) {
    %c0_i32 = arith.constant 0 : i32
    %c0_i32_0 = arith.constant 0 : i32
    return %arg0, %c0_i32 : i32, i32
  }
}

module attributes {stable_mosaic.version = 11 : i64} {
  func.func @_dual_linear_gelu_kernel(%arg0: i32, %arg1: memref<16x128xbf16, #tpu.memory_space<vmem>>, %arg2: memref<16x128xbf16, #tpu.memory_space<vmem>>, %arg3: memref<128x128xbf16, #tpu.memory_space<vmem>>, %arg4: memref<1x128xf32, #tpu.memory_space<vmem>>, %arg5: memref<128x128xbf16, #tpu.memory_space<vmem>>, %arg6: memref<1x128xf32, #tpu.memory_space<vmem>>, %arg7: memref<16x128xf32, #tpu.memory_space<vmem>>) attributes {dimension_semantics = [#tpu.dimension_semantics<parallel>], iteration_bounds = array<i64: 1>, scalar_prefetch = 0 : i64, scratch_operands = 0 : i64, tpu.core_type = #tpu.core_type<tc>, window_params = [{transform_indices = @transform_0, window_bounds = array<i64: 16, 128>}, {transform_indices = @transform_1, window_bounds = array<i64: 16, 128>}, {pipeline_mode = #tpu.pipeline_mode<synchronous>, transform_indices = @transform_2, window_bounds = array<i64: 128, 128>}, {pipeline_mode = #tpu.pipeline_mode<synchronous>, transform_indices = @transform_3, window_bounds = array<i64: 1, 128>}, {pipeline_mode = #tpu.pipeline_mode<synchronous>, transform_indices = @transform_4, window_bounds = array<i64: 128, 128>}, {pipeline_mode = #tpu.pipeline_mode<synchronous>, transform_indices = @transform_5, window_bounds = array<i64: 1, 128>}, {transform_indices = @transform_6, window_bounds = array<i64: 16, 128>}]} {
    %c0 = arith.constant 0 : index
    %c0_0 = arith.constant 0 : index
    %0 = vector.load %arg1[%c0, %c0_0] : memref<16x128xbf16, #tpu.memory_space<vmem>>, vector<16x128xbf16>
    %c0_1 = arith.constant 0 : index
    %c0_2 = arith.constant 0 : index
    %1 = vector.load %arg3[%c0_1, %c0_2] : memref<128x128xbf16, #tpu.memory_space<vmem>>, vector<128x128xbf16>
    %cst = arith.constant dense<0.000000e+00> : vector<16x128xf32>
    %2 = tpu.matmul %0, %1, %cst {dimension_numbers = #tpu.dot_dimension_numbers<[1], [0], [0], [1], [0, 0, 1, 1], [], []>} : vector<16x128xbf16>, vector<128x128xbf16>, vector<16x128xf32> -> vector<16x128xf32>
    %c0_3 = arith.constant 0 : index
    %c0_4 = arith.constant 0 : index
    %3 = vector.load %arg4[%c0_3, %c0_4] : memref<1x128xf32, #tpu.memory_space<vmem>>, vector<1x128xf32>
    %4 = vector.broadcast %3 : vector<1x128xf32> to vector<16x128xf32>
    %5 = arith.addf %2, %4 : vector<16x128xf32>
    %c0_5 = arith.constant 0 : index
    %c0_6 = arith.constant 0 : index
    %6 = vector.load %arg2[%c0_5, %c0_6] : memref<16x128xbf16, #tpu.memory_space<vmem>>, vector<16x128xbf16>
    %c0_7 = arith.constant 0 : index
    %c0_8 = arith.constant 0 : index
    %7 = vector.load %arg5[%c0_7, %c0_8] : memref<128x128xbf16, #tpu.memory_space<vmem>>, vector<128x128xbf16>
    %cst_9 = arith.constant dense<0.000000e+00> : vector<16x128xf32>
    %8 = tpu.matmul %6, %7, %cst_9 {dimension_numbers = #tpu.dot_dimension_numbers<[1], [0], [0], [1], [0, 0, 1, 1], [], []>} : vector<16x128xbf16>, vector<128x128xbf16>, vector<16x128xf32> -> vector<16x128xf32>
    %9 = arith.addf %5, %8 : vector<16x128xf32>
    %c0_10 = arith.constant 0 : index
    %c0_11 = arith.constant 0 : index
    %10 = vector.load %arg6[%c0_10, %c0_11] : memref<1x128xf32, #tpu.memory_space<vmem>>, vector<1x128xf32>
    %11 = vector.broadcast %10 : vector<1x128xf32> to vector<16x128xf32>
    %12 = arith.addf %9, %11 : vector<16x128xf32>
    %cst_12 = arith.constant 5.000000e-01 : f32
    %13 = vector.broadcast %cst_12 : f32 to vector<16x128xf32>
    %14 = arith.mulf %13, %12 : vector<16x128xf32>
    %cst_13 = arith.constant 4.471500e-02 : f32
    %15 = vector.broadcast %cst_13 : f32 to vector<16x128xf32>
    %16 = arith.mulf %15, %12 : vector<16x128xf32>
    %17 = arith.mulf %16, %12 : vector<16x128xf32>
    %18 = arith.mulf %17, %12 : vector<16x128xf32>
    %19 = arith.addf %12, %18 : vector<16x128xf32>
    %cst_14 = arith.constant 0.797884583 : f32
    %20 = vector.broadcast %cst_14 : f32 to vector<16x128xf32>
    %21 = arith.mulf %20, %19 : vector<16x128xf32>
    %22 = math.tanh %21 : vector<16x128xf32>
    %cst_15 = arith.constant 1.000000e+00 : f32
    %23 = vector.broadcast %cst_15 : f32 to vector<16x128xf32>
    %24 = arith.addf %23, %22 : vector<16x128xf32>
    %25 = arith.mulf %14, %24 : vector<16x128xf32>
    %c0_16 = arith.constant 0 : index
    %c0_17 = arith.constant 0 : index
    %26 = vector.load %arg7[%c0_16, %c0_17] : memref<16x128xf32, #tpu.memory_space<vmem>>, vector<16x128xf32>
    tpu.vector_store %arg7[%c0_16, %c0_17], %25 {strides = array<i32>} : memref<16x128xf32, #tpu.memory_space<vmem>>, vector<16x128xf32>,
    return
  }
  func.func @transform_0(%arg0: i32) -> (i32, i32) {
    %c0_i32 = arith.constant 0 : i32
    %c0_i32_0 = arith.constant 0 : i32
    return %arg0, %c0_i32 : i32, i32
  }
  func.func @transform_1(%arg0: i32) -> (i32, i32) {
    %c0_i32 = arith.constant 0 : i32
    %c0_i32_0 = arith.constant 0 : i32
    return %arg0, %c0_i32 : i32, i32
  }
  func.func @transform_2(%arg0: i32) -> (i32, i32) {
    %c0_i32 = arith.constant 0 : i32
    %c0_i32_0 = arith.constant 0 : i32
    %c0_i32_1 = arith.constant 0 : i32
    return %c0_i32, %c0_i32_0 : i32, i32
  }
  func.func @transform_3(%arg0: i32) -> (i32, i32) {
    %c0_i32 = arith.constant 0 : i32
    %c0_i32_0 = arith.constant 0 : i32
    %c0_i32_1 = arith.constant 0 : i32
    return %c0_i32, %c0_i32_0 : i32, i32
  }
  func.func @transform_4(%arg0: i32) -> (i32, i32) {
    %c0_i32 = arith.constant 0 : i32
    %c0_i32_0 = arith.constant 0 : i32
    %c0_i32_1 = arith.constant 0 : i32
    return %c0_i32, %c0_i32_0 : i32, i32
  }
  func.func @transform_5(%arg0: i32) -> (i32, i32) {
    %c0_i32 = arith.constant 0 : i32
    %c0_i32_0 = arith.constant 0 : i32
    %c0_i32_1 = arith.constant 0 : i32
    return %c0_i32, %c0_i32_0 : i32, i32
  }
  func.func @transform_6(%arg0: i32) -> (i32, i32) {
    %c0_i32 = arith.constant 0 : i32
    %c0_i32_0 = arith.constant 0 : i32
    return %arg0, %c0_i32 : i32, i32
  }
}

</mosaic_0001>

<bundles_post_ra>
// kernel: mul.33
= control target key start
LH: loop header
LB: loop body
LE: loop exit
PB: predicated region body
PF: predicated region fallthrough
CT: control target
= control target key end

     0   :  { %vm8_vm0 = vcmask 64512   ;;  %vm14_vm1 = vcmask 130112   ;;  %s42_s0 = inlined_call_operand.vmem [shape: f32[2,8], index: 0, kind: input, shape index: {}]   ;;  %s43_s1 = inlined_call_operand.vmem [shape: f32[16], index: 1, kind: output, shape index: {}]  }
   0x1   :  { %v5_v0 = vld [vmem:[%s42_s0] sm:$0x3]  ;;  %s25_s0 = smov 8  }
   0x2   :  { %6 = vst [vmem:[#allocation1] sm:$0x3] %v5_v0 }
   0x9   :  { %v11_v1 = vld [vmem:[#allocation1 + $0x1] sm:$0x1]   ;;  %v7_v2 = vld [vmem:[#allocation1] sm:$0x1]  }
   0xa   :  { %12 = vrot.lane.b32.xlu0 %v11_v1, %s25_s0  ;;  %9 = vst.msk [vmem:[#allocation0] sm:$0x1] %vm8_vm0, %v7_v2  }
  0x7c   :  { %v13_v3 = vpop.permute.xlu0 %12  }
  0x7d   :  { %15 = vst.msk [vmem:[#allocation0] sm:$0x1] %vm14_vm1, %v13_v3  }
  0x84   :  { %v20_v4 = vld [vmem:[#allocation0] sm:$0x1] }
  0x85   :  { %23 = vst [vmem:[%s43_s1] sm:$0x1] %v20_v4 }

// kernel: eq.1
= control target key start
LH: loop header
LB: loop body
LE: loop exit
PB: predicated region body
PF: predicated region fallthrough
CT: control target
= control target key end

     0   :  { %vm8_vm0 = vcmask 64512   ;;  %vm14_vm1 = vcmask 130112   ;;  %s42_s0 = inlined_call_operand.vmem [shape: s32[2,8], index: 0, kind: input, shape index: {}]   ;;  %s43_s1 = inlined_call_operand.vmem [shape: s32[16], index: 1, kind: output, shape index: {}]  }
   0x1   :  { %v5_v0 = vld [vmem:[%s42_s0] sm:$0x3]  ;;  %s25_s0 = smov 8  }
   0x2   :  { %6 = vst [vmem:[#allocation1] sm:$0x3] %v5_v0 }
   0x9   :  { %v11_v1 = vld [vmem:[#allocation1 + $0x1] sm:$0x1]   ;;  %v7_v2 = vld [vmem:[#allocation1] sm:$0x1]  }
   0xa   :  { %12 = vrot.lane.b32.xlu0 %v11_v1, %s25_s0  ;;  %9 = vst.msk [vmem:[#allocation0] sm:$0x1] %vm8_vm0, %v7_v2  }
  0x7c   :  { %v13_v3 = vpop.permute.xlu0 %12  }
  0x7d   :  { %15 = vst.msk [vmem:[#allocation0] sm:$0x1] %vm14_vm1, %v13_v3  }
  0x84   :  { %v20_v4 = vld [vmem:[#allocation0] sm:$0x1] }
  0x85   :  { %23 = vst [vmem:[%s43_s1] sm:$0x1] %v20_v4 }

// kernel: qagnn_mp_forward.7
= control target key start
LH: loop header
LB: loop body
LE: loop exit
PB: predicated region body
PF: predicated region fallthrough
CT: control target
= control target key end

     0   :  { %vm69_vm0 = vcmask 1041408   ;;  %v195_v0 = vmov 0.0   ;;  %vm196_vm1 = vmmov 0   ;;  %vm65_vm2 = vcmask 556032   ;;  %s241_s1 = inlined_call_operand.vmem [shape: bf16[68,128], index: 1, kind: input, shape index: {}]   ;;  %s242_s0 = inlined_call_operand.vmem [shape: bf16[16,68], index: 0, kind: input, shape index: {}]   ;;  %s243_s2 = inlined_call_operand.vmem [shape: f32[1,128], index: 2, kind: input, shape index: {}]   ;;  %s244_s3 = inlined_call_operand.vmem [shape: bf16[16,128], index: 3, kind: output, shape index: {}]  }
   0x1   :  { %169 = vmatprep.subr.bf16.mxu0 %v195_v0  ;;  %v185_v1 = vld [vmem:[%s241_s1 + $0x20] ss:$0 sps:$4 sm:$0x33]   ;;  %179 = vmatprep.mubr.msk.bf16.mxu0 %vm196_vm1, %v195_v0  ;;  %v186_v3 = vld [vmem:[%s241_s1 + $0x18] sm:$0xff]   ;;  %v187_v4 = vld [vmem:[%s241_s1 + $0x10] sm:$0xff]  }
   0x2   :  { %v71_v2 = vsel %vm69_vm0, %v185_v1, 0  ;;  %v188_v5 = vld [vmem:[%s241_s1 + $0x8] sm:$0xff]   ;;  %v189_v6 = vld [vmem:[%s241_s1] sm:$0xff]  }
   0x3   :  { %170 = vmatpush3.bf16.msra.mxu0 %v71_v2  ;;  %v190_v7 = vld [vmem:[%s242_s0] sm:$0xff]  }
   0x4   :  { %171 = vmatprep.subr.bf16.mxu0 %v195_v0  ;;  %v146_v8 = vld [vmem:[%s243_s2] ss:$0 sm:$0xff] }
   0x7   :  { %172 = vmatpush3.bf16.msra.mxu0 %v186_v3 }
   0x8   :  { %173 = vmatprep.subr.bf16.mxu0 %v195_v0 }
   0xb   :  { %174 = vmatpush3.bf16.msra.mxu0 %v187_v4 }
   0xc   :  { %175 = vmatprep.subr.bf16.mxu0 %v195_v0 }
   0xf   :  { %176 = vmatpush3.bf16.msra.mxu0 %v188_v5 }
  0x10   :  { %177 = vmatprep.subr.bf16.mxu0 %v195_v0 }
  0x13   :  { %178 = vmatpush3.bf16.msra.mxu0 %v189_v6 }
  0x16   :  { %180 = vmatmul.mubr.msk.bf16.vlgmr.msra.gmra.mxu0 %vm65_vm2, %v190_v7 }
  0xd6   :  { %v107_v9 = vpop.f32.mrf.mxu0 }
  0xd7   :  { %v108_v10 = vadd.f32 %v146_v8, %v107_v9 }
  0xd8   :  { %v181_v11 = vpop.f32.mrf.mxu0 }
  0xd9   :  { %v116_v12 = vmul.f32 0.044715, %v108_v10  ;;  %v114_v28 = vmul.f32 0.5, %v108_v10 }
  0xda   :  { %v110_v13 = vpop.f32.mrf.mxu0 }
  0xdb   :  { %v118_v14 = vmul.f32 %v116_v12, %v108_v10  ;;  %v111_v15 = vadd.f32 %v146_v8, %v110_v13 }
  0xdc   :  { %v182_v16 = vpop.f32.mrf.mxu0 }
  0xdd   :  { %v120_v17 = vmul.f32 %v118_v14, %v108_v10  ;;  %v117_v18 = vmul.f32 0.044715, %v111_v15  ;;  %v115_v29 = vmul.f32 0.5, %v111_v15 }
  0xdf   :  { %v122_v19 = vadd.f32 %v120_v17, %v108_v10  ;;  %v119_v20 = vmul.f32 %v117_v18, %v111_v15 }
  0xe1   :  { %v124_v21 = vmul.f32 0.7978846, %v122_v19  ;;  %v121_v22 = vmul.f32 %v119_v20, %v111_v15 }
  0xe3   :  { %191 = vtanh.f32 %v124_v21  ;;  %v123_v23 = vadd.f32 %v121_v22, %v111_v15 }
  0xe5   :  { %v125_v24 = vmul.f32 0.7978846, %v123_v23 }
  0xe7   :  { %193 = vtanh.f32 %v125_v24 }
  0xf0   :  { %v192_v25 = vpop.eup %191 }
  0xf1   :  { %v128_v26 = vadd.f32 1.0, %v192_v25 }
  0xf3   :  { %v130_v31 = vmul.f32 %v128_v26, %v114_v28 }
  0xf4   :  { %v194_v27 = vpop.eup %193 }
  0xf5   :  { %v129_v30 = vadd.f32 1.0, %v194_v27 }
  0xf7   :  { %v131_v32 = vmul.f32 %v129_v30, %v115_v29 }
  0xf9   :  { %v161_v33 = vpack.c.bf16 %v131_v32, %v130_v31 }
  0xfb   :  { %162 = vst [vmem:[%s244_s3] sm:$0xff] %v161_v33  }

// kernel: qagnn_mp_forward.8
= control target key start
LH: loop header
LB: loop body
LE: loop exit
PB: predicated region body
PF: predicated region fallthrough
CT: control target
= control target key end

     0   :  { %s665_s18 = smov 0   ;;  %s722_s0 = inlined_call_operand.vmem [shape: bf16[64,15], index: 0, kind: input, shape index: {}]   ;;  %s723_s1 = inlined_call_operand.vmem [shape: bf16[15,128], index: 1, kind: input, shape index: {}]   ;;  %s724_s2 = inlined_call_operand.vmem [shape: f32[1,128], index: 2, kind: input, shape index: {}]   ;;  %s725_s3 = inlined_call_operand.vmem [shape: bf16[128,128], index: 3, kind: input, shape index: {}]   ;;  %s726_s4 = inlined_call_operand.vmem [shape: f32[1,128], index: 4, kind: input, shape index: {}]   ;;  %s727_s5 = inlined_call_operand.vmem [shape: bf16[64,128], index: 5, kind: output, shape index: {}]  }
   0x1 LB: > { %s522_s19 = sadd.s32 4294967295, %s632_s18   ;;  %p526_p0 = scmp.ge.s32.totalorder %s632_s18, 1  ;;  %s632_s18 = sphi %s665_s18, %s15_s18  }
   0x2   : > { %p188_p1 = scmp.lt.s32.totalorder %s632_s18, 3 }
   0x4   : > { %p189_p2 = pnand %p526_p0, %p188_p1 }
   0x5   : > { %s527_s22 = sshll.u32 (!%p189_p2), %s522_s19, 2 }
   0x6   : > { %192 = sbr.rel (%p189_p2) target bundleno = 430 (0x1ae), region = 40  ;;  %p217_p3 = scmp.lt.s32.totalorder (!%p189_p2), %s527_s22, 7 }
   0xb   : > { %v615_v0 = vld [vmem:[%s723_s1] sm:$0xff]   ;;  %vm264_vm0 = vcmask 1046528   ;;  %vm265_vm1 = vcmask 1047552   ;;  %v634_v1 = vmov 65535   ;;  %v618_v3 = vld [vmem:[%s725_s3 + $0x38] sm:$0xff]   ;;  %v619_v4 = vld [vmem:[%s725_s3 + $0x30] sm:$0xff]  }
   0xc   : > { %v266_v2 = vsel %vm264_vm0, 4294967295, %v634_v1  ;;  %s729_s22 = smov (!%p217_p3, %s527_s22), 7  ;;  %vm257_vm2 = vcmask 121856   ;;  %586 = vmatprep.subr.bf16.mxu1 %v618_v3  ;;  %v620_v7 = vld [vmem:[%s725_s3 + $0x28] sm:$0xff]   ;;  %v621_v10 = vld [vmem:[%s725_s3 + $0x20] sm:$0xff]   ;;  %v622_v11 = vld [vmem:[%s725_s3 + $0x18] sm:$0xff]  }
   0xd   : > { %v267_v5 = vsel %vm265_vm1, %v266_v2, 0  ;;  %587 = vmatpush3.bf16.msra.mxu1 %v618_v3  ;;  %s528_s27 = sshll.u32 %s729_s22, 2  ;;  %v623_v12 = vld [vmem:[%s725_s3 + $0x10] sm:$0xff]   ;;  %v624_v13 = vld [vmem:[%s725_s3 + $0x8] sm:$0xff]   ;;  %v625_v14 = vld [vmem:[%s725_s3] sm:$0xff]  }
   0xe   : > { %v269_v6 = vand.u32 %v615_v0, %v267_v5  ;;  %588 = vmatprep.subr.bf16.mxu1 %v619_v4  ;;  %s220_s7 = scalar_lea.vmem %s722_s0, %s528_s27  ;;  %v531_v17 = vld [vmem:[%s724_s2] ss:$0 sm:$0xff]  ;;  %s226_s26 = scalar_lea.vmem %s727_s5, %s528_s27 }
   0xf   : > { %v616_v8 = vld [vmem:[%s220_s7] sm:$0xff]   ;;  %v617_v9 = vld [vmem:[%s220_s7 + $0x8] sm:$0xff]  }
  0x10   : > { %580 = vmatprep.subr.bf16.mxu0 %v269_v6  ;;  %582 = vmatprep.mubr.msk.bf16.mxu0 %vm257_vm2, %v616_v8  ;;  %v537_v33 = vld [vmem:[%s726_s4] ss:$0 sm:$0xff] }
  0x11   : > { %581 = vmatpush3.bf16.msra.mxu0 %v269_v6  ;;  %589 = vmatpush3.bf16.msra.mxu1 %v619_v4 }
  0x12   : > { %590 = vmatprep.subr.bf16.mxu1 %v620_v7 }
  0x14   : > { %583 = vmatmul.mubr.msk.bf16.vlgmr.msra.gmra.mxu0 %vm257_vm2, %v617_v9 }
  0x15   : > { %591 = vmatpush3.bf16.msra.mxu1 %v620_v7 }
  0x16   : > { %592 = vmatprep.subr.bf16.mxu1 %v621_v10 }
  0x19   : > { %593 = vmatpush3.bf16.msra.mxu1 %v621_v10 }
  0x1a   : > { %594 = vmatprep.subr.bf16.mxu1 %v622_v11 }
  0x1d   : > { %595 = vmatpush3.bf16.msra.mxu1 %v622_v11 }
  0x1e   : > { %596 = vmatprep.subr.bf16.mxu1 %v623_v12 }
  0x21   : > { %597 = vmatpush3.bf16.msra.mxu1 %v623_v12 }
  0x22   : > { %598 = vmatprep.subr.bf16.mxu1 %v624_v13 }
  0x25   : > { %599 = vmatpush3.bf16.msra.mxu1 %v624_v13 }
  0x26   : > { %600 = vmatprep.subr.bf16.mxu1 %v625_v14 }
  0x29   : > { %601 = vmatpush3.bf16.msra.mxu1 %v625_v14 }
  0xd4   : > { %v584_v15 = vpop.f32.mrf.mxu0 }
  0xd5   : > { %v314_v21 = vadd.f32 %v584_v15, %v531_v17 }
  0xd6   : > { %v305_v16 = vpop.f32.mrf.mxu0 }
  0xd7   : > { %v306_v19 = vadd.f32 %v531_v17, %v305_v16  ;;  %v322_v27 = vmax.f32 %v314_v21, 0.0 }
  0xd8   : > { %v585_v18 = vpop.f32.mrf.mxu0 }
  0xd9   : > { %v317_v20 = vadd.f32 %v585_v18, %v531_v17  ;;  %v320_v25 = vmax.f32 %v306_v19, 0.0 }
  0xda   : > { %v308_v22 = vpop.f32.mrf.mxu0 }
  0xdb   : > { %v309_v23 = vadd.f32 %v531_v17, %v308_v22  ;;  %v323_v24 = vmax.f32 %v317_v20, 0.0 }
  0xdd   : > { %v321_v26 = vmax.f32 %v309_v23, 0.0  ;;  %v325_v29 = vpack.c.bf16 %v323_v24, %v322_v27 }
  0xdf   : > { %v324_v28 = vpack.c.bf16 %v321_v26, %v320_v25 }
  0xe1   : > { %602 = vmatprep.mubr.bf16.mxu1 %v324_v28 }
  0xe2   : > { %603 = vmatmul.mubr.bf16.vlgmr.msra.gmra.mxu1 %v325_v29 }
 0x1a2   : > { %v604_v30 = vpop.f32.mrf.mxu1 }
 0x1a3   : > { %v440_v38 = vadd.f32 %v604_v30, %v537_v33 }
 0x1a4   : > { %v431_v31 = vpop.f32.mrf.mxu1 }
 0x1a5   : > { %v432_v36 = vadd.f32 %v537_v33, %v431_v31 }
 0x1a6   : > { %v605_v32 = vpop.f32.mrf.mxu1 }
 0x1a7   : > { %v443_v34 = vadd.f32 %v605_v32, %v537_v33 }
 0x1a8   : > { %v434_v35 = vpop.f32.mrf.mxu1 }
 0x1a9   : > { %v435_v37 = vadd.f32 %v537_v33, %v434_v35  ;;  %v564_v40 = vpack.c.bf16 %v443_v34, %v440_v38 }
 0x1ab   : > { %v559_v39 = vpack.c.bf16 %v435_v37, %v432_v36  ;;  %566 = vst [vmem:[%s226_s26 + $0x8] sm:$0xff] %v564_v40  }
 0x1ad   : > { %560 = vst [vmem:[%s226_s26] sm:$0xff] %v559_v39  }
 0x1ae PF: > { %s15_s18 = sadd.s32 1, %s632_s18  }
 0x1af   : > { %p12_p4 = scmp.ge.s32.totalorder %s15_s18, 4  }
 0x1b1   :  { %14 = sbr.rel (!%p12_p4) target bundleno = 1 (0x1), region = 70 }

// kernel: qagnn_mp_forward.9
= control target key start
LH: loop header
LB: loop body
LE: loop exit
PB: predicated region body
PF: predicated region fallthrough
CT: control target
= control target key end

     0   :  { %s2108_s18 = smov 0   ;;  %s2406_s0 = inlined_call_operand.vmem [shape: bf16[64,128], index: 0, kind: input, shape index: {}]   ;;  %s2407_s1 = inlined_call_operand.vmem [shape: bf16[64,128], index: 1, kind: input, shape index: {}]   ;;  %s2408_s2 = inlined_call_operand.vmem [shape: bf16[64,128], index: 2, kind: input, shape index: {}]   ;;  %s2409_s3 = inlined_call_operand.vmem [shape: bf16[64,128], index: 3, kind: input, shape index: {}]   ;;  %s2410_s4 = inlined_call_operand.vmem [shape: bf16[64,128], index: 4, kind: input, shape index: {}]   ;;  %s2411_s5 = inlined_call_operand.vmem [shape: bf16[128,128], index: 5, kind: input, shape index: {}]   ;;  %s2412_s6 = inlined_call_operand.vmem [shape: bf16[128,128], index: 6, kind: input, shape index: {}]   ;;  %s2413_s7 = inlined_call_operand.vmem [shape: bf16[128,256], index: 7, kind: input, shape index: {}]   ;;  %s2414_s8 = inlined_call_operand.vmem [shape: bf16[128,256], index: 8, kind: input, shape index: {}]   ;;  %s2415_s9 = inlined_call_operand.vmem [shape: bf16[128,256], index: 9, kind: input, shape index: {}]   ;;  %s2416_s10 = inlined_call_operand.vmem [shape: f32[1,128], index: 10, kind: input, shape index: {}]   ;;  %s2417_s11 = inlined_call_operand.vmem [shape: f32[1,128], index: 11, kind: input, shape index: {}]   ;;  %s2418_s12 = inlined_call_operand.vmem [shape: f32[1,128], index: 12, kind: input, shape index: {}]   ;;  %s2419_s13 = inlined_call_operand.vmem [shape: bf16[128,8], index: 13, kind: input, shape index: {}]   ;;  %s2420_s14 = inlined_call_operand.vmem [shape: f32[64,8], index: 14, kind: output, shape index: {0}]   ;;  %s2421_s15 = inlined_call_operand.vmem [shape: bf16[64,128], index: 15, kind: output, shape index: {1}]  }
   0x1   :  { %2422 = sst [smem:[#allocation2_spill]] %s2407_s1 }
   0x2 LB: > { %s1689_s19 = sadd.s32 4294967295, %s2025_s18   ;;  %p1693_p0 = scmp.ge.s32.totalorder %s2025_s18, 1  ;;  %s2025_s18 = sphi %s2108_s18, %s26_s18  }
   0x3   : > { %p485_p1 = scmp.lt.s32.totalorder %s2025_s18, 3 }
   0x5   : > { %p486_p2 = pnand %p1693_p0, %p485_p1 }
   0x6   : > { %s1694_s22 = sshll.u32 (!%p486_p2), %s1689_s19, 2  ;;  %s2423_s1 = sld [smem:[#allocation2_spill]] (!%p486_p2) }
   0x7   : > { %489 = sbr.rel (%p486_p2) target bundleno = 520 (0x208), region = 76  ;;  %p559_p3 = scmp.lt.s32.totalorder (!%p486_p2), %s1694_s22, 7 }
   0xc   : > { %v1913_v0 = vld [vmem:[%s2413_s7 + $0x74] ss:$8 sps:$4 sm:$0xff]   ;;  %v1915_v1 = vld [vmem:[%s2413_s7 + $0x70] ss:$8 sps:$4 sm:$0xff]   ;;  %v2027_v2 = vmov 0   ;;  %s2425_s22 = smov (!%p559_p3, %s1694_s22), 7 }
   0xd   : > { %745 = vmatprep.mubr.bf16.mxu0 %v2027_v2  ;;  %910 = vmatprep.mubr.bf16.mxu1 %v2027_v2  ;;  %v1916_v3 = vld [vmem:[%s2413_s7 + $0x64] ss:$8 sps:$4 sm:$0xff]   ;;  %v1918_v4 = vld [vmem:[%s2413_s7 + $0x60] ss:$8 sps:$4 sm:$0xff]   ;;  %v1919_v5 = vld [vmem:[%s2413_s7 + $0x54] ss:$8 sps:$4 sm:$0xff]  }
   0xe   : > { %713 = vmatprep.subr.bf16.mxu0 %v1913_v0  ;;  %v1921_v6 = vld [vmem:[%s2413_s7 + $0x50] ss:$8 sps:$4 sm:$0xff]   ;;  %v1922_v7 = vld [vmem:[%s2413_s7 + $0x44] ss:$8 sps:$4 sm:$0xff]   ;;  %s2142_s21 = sshll.u32 %s2425_s22, 2  ;;  %vm1526_vm0 = vcmask 64512  }
   0xf   : > { %714 = vmatpush1.bf16.msra.mxu0 %v1915_v1  ;;  %v1934_v8 = vld [vmem:[%s2414_s8 + $0x74] ss:$8 sps:$4 sm:$0xff]   ;;  %v1936_v9 = vld [vmem:[%s2414_s8 + $0x70] ss:$8 sps:$4 sm:$0xff]   ;;  %v1924_v10 = vld [vmem:[%s2413_s7 + $0x40] ss:$8 sps:$4 sm:$0xff]   ;;  %s2163_s23 = scalar_lea.vmem %s2410_s4, %s2142_s21  ;;  %s2230_s19 = scalar_lea.vmem %s2408_s2, %s2142_s21 }
  0x10   : > { %715 = vmatprep.subr.bf16.mxu0 %v1916_v3  ;;  %v1925_v11 = vld [vmem:[%s2413_s7 + $0x34] ss:$8 sps:$4 sm:$0xff]   ;;  %878 = vmatprep.subr.bf16.mxu1 %v1934_v8  ;;  %v1940_v12 = vld [vmem:[%s2414_s8 + $0x64] ss:$8 sps:$4 sm:$0xff]   ;;  %v1942_v13 = vld [vmem:[%s2414_s8 + $0x60] ss:$8 sps:$4 sm:$0xff]   ;;  %s2250_s20 = scalar_lea.vmem %s2409_s3, %s2142_s21  ;;  %s2293_s28 = scalar_lea.vmem %s2423_s1, %s2142_s21 }
  0x11   : > { %879 = vmatpush1.bf16.msra.mxu1 %v1936_v9  ;;  %v1927_v14 = vld [vmem:[%s2413_s7 + $0x30] ss:$8 sps:$4 sm:$0xff]   ;;  %v1928_v15 = vld [vmem:[%s2413_s7 + $0x24] ss:$8 sps:$4 sm:$0xff]   ;;  %v1947_v16 = vld [vmem:[%s2414_s8 + $0x54] ss:$8 sps:$4 sm:$0xff]   ;;  %s2312_s29 = scalar_lea.vmem %s2406_s0, %s2142_s21 }
  0x12   : > { %880 = vmatprep.subr.bf16.mxu1 %v1940_v12  ;;  %v1949_v17 = vld [vmem:[%s2414_s8 + $0x50] ss:$8 sps:$4 sm:$0xff]   ;;  %v1930_v18 = vld [vmem:[%s2413_s7 + $0x20] ss:$8 sps:$4 sm:$0xff]   ;;  %v1953_v19 = vld [vmem:[%s2414_s8 + $0x44] ss:$8 sps:$4 sm:$0xff]  }
  0x13   : > { %716 = vmatpush1.bf16.msra.mxu0 %v1918_v4  ;;  %v1931_v20 = vld [vmem:[%s2413_s7 + $0x14] ss:$8 sps:$4 sm:$0xff]   ;;  %v1955_v21 = vld [vmem:[%s2414_s8 + $0x40] ss:$8 sps:$4 sm:$0xff]   ;;  %v1933_v23 = vld [vmem:[%s2413_s7 + $0x10] ss:$8 sps:$4 sm:$0xff]  }
  0x14   : > { %717 = vmatprep.subr.bf16.mxu0 %v1919_v5  ;;  %v1959_v22 = vld [vmem:[%s2414_s8 + $0x34] ss:$8 sps:$4 sm:$0xff]   ;;  %v1937_v24 = vld [vmem:[%s2413_s7 + $0x4] ss:$8 sps:$4 sm:$0xff]   ;;  %v1961_v25 = vld [vmem:[%s2414_s8 + $0x30] ss:$8 sps:$4 sm:$0xff]  }
  0x15   : > { %881 = vmatpush1.bf16.msra.mxu1 %v1942_v13  ;;  %v1965_v26 = vld [vmem:[%s2414_s8 + $0x24] ss:$8 sps:$4 sm:$0xff]   ;;  %v1939_v27 = vld [vmem:[%s2413_s7] ss:$8 sps:$4 sm:$0xff]   ;;  %v1946_v28 = vld [vmem:[%s2415_s9 + $0x74] ss:$8 sps:$4 sm:$0xff]  }
  0x16   : > { %882 = vmatprep.subr.bf16.mxu1 %v1947_v16  ;;  %v1943_v29 = vld [vmem:[%s2163_s23] sm:$0xff]   ;;  %v1971_v31 = vld [vmem:[%s2414_s8 + $0x14] ss:$8 sps:$4 sm:$0xff]   ;;  %v1944_v32 = vld [vmem:[%s2415_s9 + $0x70] ss:$8 sps:$4 sm:$0xff]  }
  0x17   : > { %718 = vmatpush1.bf16.msra.mxu0 %v1921_v6  ;;  %v1967_v30 = vld [vmem:[%s2414_s8 + $0x20] ss:$8 sps:$4 sm:$0xff]   ;;  %v1952_v33 = vld [vmem:[%s2415_s9 + $0x64] ss:$8 sps:$4 sm:$0xff]   ;;  %v1974_v34 = vld [vmem:[%s2414_s8 + $0x10] ss:$8 sps:$4 sm:$0xff]  }
  0x18   : > { %719 = vmatprep.subr.bf16.mxu0 %v1922_v7  ;;  %v1978_v35 = vld [vmem:[%s2414_s8 + $0x4] ss:$8 sps:$4 sm:$0xff]   ;;  %v1950_v36 = vld [vmem:[%s2415_s9 + $0x60] ss:$8 sps:$4 sm:$0xff]   ;;  %v1958_v37 = vld [vmem:[%s2415_s9 + $0x54] ss:$8 sps:$4 sm:$0xff]  }
  0x19   : > { %883 = vmatpush1.bf16.msra.mxu1 %v1949_v17  ;;  %v1973_v38 = vld [vmem:[%s2163_s23 + $0x8] sm:$0xff]   ;;  %v1956_v39 = vld [vmem:[%s2415_s9 + $0x50] ss:$8 sps:$4 sm:$0xff]   ;;  %v1985_v43 = vld [vmem:[%s2230_s19] sm:$0xff]  }
  0x1a   : > { %884 = vmatprep.subr.bf16.mxu1 %v1953_v19  ;;  %v1980_v40 = vld [vmem:[%s2414_s8] ss:$8 sps:$4 sm:$0xff]   ;;  %v1984_v41 = vld [vmem:[%s2412_s6 + $0x38] sm:$0xff]   ;;  %v1964_v42 = vld [vmem:[%s2415_s9 + $0x44] ss:$8 sps:$4 sm:$0xff]  }
  0x1b   : > { %720 = vmatpush1.bf16.msra.mxu0 %v1924_v10  ;;  %v1989_v44 = vld [vmem:[%s2412_s6 + $0x30] sm:$0xff]   ;;  %v1962_v45 = vld [vmem:[%s2415_s9 + $0x40] ss:$8 sps:$4 sm:$0xff]   ;;  %v1977_v49 = vld [vmem:[%s2415_s9 + $0x24] ss:$8 sps:$4 sm:$0xff]  }
  0x1c   : > { %721 = vmatprep.subr.bf16.mxu0 %v1925_v11  ;;  %v1970_v46 = vld [vmem:[%s2415_s9 + $0x34] ss:$8 sps:$4 sm:$0xff]   ;;  %v1968_v47 = vld [vmem:[%s2415_s9 + $0x30] ss:$8 sps:$4 sm:$0xff]   ;;  %v1992_v48 = vld [vmem:[%s2412_s6 + $0x28] sm:$0xff]  }
  0x1d   : > { %885 = vmatpush1.bf16.msra.mxu1 %v1955_v21  ;;  %v1995_v50 = vld [vmem:[%s2230_s19 + $0x8] sm:$0xff]   ;;  %v1994_v51 = vld [vmem:[%s2412_s6 + $0x20] sm:$0xff]   ;;  %v1983_v53 = vld [vmem:[%s2415_s9 + $0x14] ss:$8 sps:$4 sm:$0xff]   ;;  %s1705_s19 = sshll.u32 %s2425_s22, 3 }
  0x1e   : > { %886 = vmatprep.subr.bf16.mxu1 %v1959_v22  ;;  %v1975_v52 = vld [vmem:[%s2415_s9 + $0x20] ss:$8 sps:$4 sm:$0xff]   ;;  %v1998_v55 = vld [vmem:[%s2412_s6 + $0x18] sm:$0xff]   ;;  %v1988_v57 = vld [vmem:[%s2415_s9 + $0x4] ss:$8 sps:$4 sm:$0xff]   ;;  %s592_s17 = scalar_lea.vmem %s2420_s14, %s1705_s19 }
  0x1f   : > { %722 = vmatpush1.bf16.msra.mxu0 %v1927_v14  ;;  %v2006_v54 = vld [vmem:[%s2293_s28] sm:$0xff]   ;;  %v1981_v56 = vld [vmem:[%s2415_s9 + $0x10] ss:$8 sps:$4 sm:$0xff]   ;;  %v2002_v62 = vld [vmem:[%s2412_s6 + $0x8] sm:$0xff]  }
  0x20   : > { %723 = vmatprep.subr.bf16.mxu0 %v1928_v15  ;;  %v1986_v58 = vld [vmem:[%s2415_s9] ss:$8 sps:$4 sm:$0xff]   ;;  %v2000_v59 = vld [vmem:[%s2412_s6 + $0x10] sm:$0xff]   ;;  %v1991_v60 = vld [vmem:[%s2411_s5 + $0x38] sm:$0xff]  }
  0x21   : > { %887 = vmatpush1.bf16.msra.mxu1 %v1961_v25  ;;  %v1990_v61 = vld [vmem:[%s2250_s20] sm:$0xff]   ;;  %v1993_v63 = vld [vmem:[%s2411_s5 + $0x30] sm:$0xff]   ;;  %v1997_v1 = vld [vmem:[%s2411_s5 + $0x28] sm:$0xff]  }
  0x22   : > { %888 = vmatprep.subr.bf16.mxu1 %v1965_v26  ;;  %v2004_v0 = vld [vmem:[%s2412_s6] sm:$0xff]   ;;  %v1996_v3 = vld [vmem:[%s2250_s20 + $0x8] sm:$0xff]   ;;  %v2003_v7 = vld [vmem:[%s2411_s5 + $0x10] sm:$0xff]   ;;  %s598_s20 = scalar_lea.vmem %s2421_s15, %s2142_s21 }
  0x23   : > { %724 = vmatpush1.bf16.msra.mxu0 %v1930_v18  ;;  %v2009_v4 = vld [vmem:[%s2312_s29] sm:$0xff]   ;;  %v2007_v6 = vld [vmem:[%s2293_s28 + $0x8] sm:$0xff]   ;;  %v2011_v11 = vld [vmem:[%s2419_s13 + $0x38] sm:$0xff]  }
  0x24   : > { %725 = vmatprep.subr.bf16.mxu0 %v1931_v20  ;;  %v1999_v5 = vld [vmem:[%s2411_s5 + $0x20] sm:$0xff]   ;;  %v2005_v8 = vld [vmem:[%s2411_s5 + $0x8] sm:$0xff]   ;;  %v2012_v12 = vld [vmem:[%s2419_s13 + $0x30] sm:$0xff]  }
  0x25   : > { %889 = vmatpush1.bf16.msra.mxu1 %v1967_v30  ;;  %v2008_v9 = vld [vmem:[%s2411_s5] sm:$0xff]   ;;  %v2010_v10 = vld [vmem:[%s2312_s29 + $0x8] sm:$0xff]   ;;  %v2015_v15 = vld [vmem:[%s2419_s13 + $0x18] sm:$0xff]  }
  0x26   : > { %890 = vmatprep.subr.bf16.mxu1 %v1971_v31  ;;  %v2013_v13 = vld [vmem:[%s2419_s13 + $0x28] sm:$0xff]   ;;  %v2014_v14 = vld [vmem:[%s2419_s13 + $0x20] sm:$0xff]   ;;  %v2016_v16 = vld [vmem:[%s2419_s13 + $0x10] sm:$0xff]  }
  0x27   : > { %726 = vmatpush1.bf16.msra.mxu0 %v1933_v23  ;;  %v2017_v17 = vld [vmem:[%s2419_s13 + $0x8] sm:$0xff]   ;;  %v2018_v18 = vld [vmem:[%s2419_s13] sm:$0xff]  }
  0x28   : > { %727 = vmatprep.subr.bf16.mxu0 %v1937_v24 }
  0x29   : > { %891 = vmatpush1.bf16.msra.mxu1 %v1974_v34 }
  0x2a   : > { %892 = vmatprep.subr.bf16.mxu1 %v1978_v35 }
  0x2b   : > { %728 = vmatpush1.bf16.msra.mxu0 %v1939_v27 }
  0x2c   : > { %1043 = vmatprep.subr.bf16.mxu0 %v1946_v28 }
  0x2d   : > { %893 = vmatpush1.bf16.msra.mxu1 %v1980_v40 }
  0x2e   : > { %746 = vmatmul.mubr.bf16.vlgmr.msra.gmra.mxu0 %v1943_v29  ;;  %1844 = vmatprep.subr.bf16.mxu1 %v1984_v41 }
  0x2f   : > { %1044 = vmatpush1.bf16.msra.mxu0 %v1944_v32  ;;  %755 = vmatprep.mubr.bf16.mxu0 %v2027_v2 }
  0x30   : > { %1045 = vmatprep.subr.bf16.mxu0 %v1952_v33  ;;  %911 = vmatmul.mubr.bf16.vlgmr.msra.gmra.mxu1 %v1985_v43 }
  0x31   : > { %1845 = vmatpush3.bf16.msra.mxu1 %v1984_v41  ;;  %920 = vmatprep.mubr.bf16.mxu1 %v2027_v2 }
  0x32   : > { %1846 = vmatprep.subr.bf16.mxu1 %v1989_v44 }
  0x33   : > { %1046 = vmatpush1.bf16.msra.mxu0 %v1950_v36 }
  0x34   : > { %1047 = vmatprep.subr.bf16.mxu0 %v1958_v37 }
  0x35   : > { %1847 = vmatpush3.bf16.msra.mxu1 %v1989_v44 }
  0x36   : > { %756 = vmatmul.mubr.bf16.gmra.mxu0 %v1973_v38  ;;  %1848 = vmatprep.subr.bf16.mxu1 %v1992_v48  ;;  %v1783_v38 = vld [vmem:[%s2417_s11] ss:$0 sm:$0xff] }
  0x37   : > { %1048 = vmatpush1.bf16.msra.mxu0 %v1956_v39  ;;  %1075 = vmatprep.mubr.bf16.mxu0 %v2027_v2 }
  0x38   : > { %1049 = vmatprep.subr.bf16.mxu0 %v1964_v42  ;;  %921 = vmatmul.mubr.bf16.gmra.mxu1 %v1995_v50 }
  0x39   : > { %1849 = vmatpush3.bf16.msra.mxu1 %v1992_v48  ;;  %1860 = vmatprep.mubr.bf16.mxu1 %v2006_v54 }
  0x3a   : > { %1850 = vmatprep.subr.bf16.mxu1 %v1994_v51 }
  0x3b   : > { %1050 = vmatpush1.bf16.msra.mxu0 %v1962_v45 }
  0x3c   : > { %1051 = vmatprep.subr.bf16.mxu0 %v1970_v46 }
  0x3d   : > { %1851 = vmatpush3.bf16.msra.mxu1 %v1994_v51 }
  0x3e   : > { %1852 = vmatprep.subr.bf16.mxu1 %v1998_v55 }
  0x3f   : > { %1052 = vmatpush1.bf16.msra.mxu0 %v1968_v47 }
  0x40   : > { %1053 = vmatprep.subr.bf16.mxu0 %v1977_v49 }
  0x41   : > { %1853 = vmatpush3.bf16.msra.mxu1 %v1998_v55 }
  0x42   : > { %1854 = vmatprep.subr.bf16.mxu1 %v2000_v59 }
  0x43   : > { %1054 = vmatpush1.bf16.msra.mxu0 %v1975_v52 }
  0x44   : > { %1055 = vmatprep.subr.bf16.mxu0 %v1983_v53 }
  0x45   : > { %1855 = vmatpush3.bf16.msra.mxu1 %v2000_v59 }
  0x46   : > { %1856 = vmatprep.subr.bf16.mxu1 %v2002_v62 }
  0x47   : > { %1056 = vmatpush1.bf16.msra.mxu0 %v1981_v56 }
  0x48   : > { %1057 = vmatprep.subr.bf16.mxu0 %v1988_v57 }
  0x49   : > { %1857 = vmatpush3.bf16.msra.mxu1 %v2002_v62 }
  0x4a   : > { %1858 = vmatprep.subr.bf16.mxu1 %v2004_v0 }
  0x4b   : > { %1058 = vmatpush1.bf16.msra.mxu0 %v1986_v58 }
  0x4c   : > { %1864 = vmatprep.subr.bf16.mxu0 %v1991_v60 }
  0x4d   : > { %1859 = vmatpush3.bf16.msra.mxu1 %v2004_v0 }
  0x4e   : > { %1076 = vmatmul.mubr.bf16.vlgmr.msra.gmra.mxu0 %v1990_v61  ;;  %1884 = vmatprep.subr.bf16.mxu1 %v2011_v11 }
  0x4f   : > { %1865 = vmatpush3.bf16.msra.mxu0 %v1991_v60  ;;  %1085 = vmatprep.mubr.bf16.mxu0 %v2027_v2  ;;  %v2001_v2 = vld [vmem:[%s2411_s5 + $0x18] sm:$0xff]  }
  0x50   : > { %1866 = vmatprep.subr.bf16.mxu0 %v1993_v63  ;;  %1861 = vmatmul.mubr.bf16.vlgmr.msra.gmra.mxu1 %v2007_v6 }
  0x51   : > { %1885 = vmatpush3.bf16.msra.mxu1 %v2011_v11 }
  0x52   : > { %1886 = vmatprep.subr.bf16.mxu1 %v2012_v12 }
  0x53   : > { %1867 = vmatpush3.bf16.msra.mxu0 %v1993_v63 }
  0x54   : > { %1868 = vmatprep.subr.bf16.mxu0 %v1997_v1 }
  0x55   : > { %1887 = vmatpush3.bf16.msra.mxu1 %v2012_v12 }
  0x56   : > { %1086 = vmatmul.mubr.bf16.gmra.mxu0 %v1996_v3  ;;  %1888 = vmatprep.subr.bf16.mxu1 %v2013_v13 }
  0x57   : > { %1869 = vmatpush3.bf16.msra.mxu0 %v1997_v1  ;;  %1880 = vmatprep.mubr.bf16.mxu0 %v2009_v4 }
  0x58   : > { %1870 = vmatprep.subr.bf16.mxu0 %v1999_v5 }
  0x59   : > { %1889 = vmatpush3.bf16.msra.mxu1 %v2013_v13 }
  0x5a   : > { %1890 = vmatprep.subr.bf16.mxu1 %v2014_v14 }
  0x5b   : > { %1871 = vmatpush3.bf16.msra.mxu0 %v1999_v5  ;;  %v1784_v5 = vld [vmem:[%s2418_s12] ss:$0 sm:$0xff] }
  0x5c   : > { %1872 = vmatprep.subr.bf16.mxu0 %v2001_v2 }
  0x5d   : > { %1891 = vmatpush3.bf16.msra.mxu1 %v2014_v14 }
  0x5e   : > { %1892 = vmatprep.subr.bf16.mxu1 %v2015_v15 }
  0x5f   : > { %1873 = vmatpush3.bf16.msra.mxu0 %v2001_v2 }
  0x60   : > { %1874 = vmatprep.subr.bf16.mxu0 %v2003_v7 }
  0x61   : > { %1893 = vmatpush3.bf16.msra.mxu1 %v2015_v15  ;;  %v1782_v15 = vld [vmem:[%s2416_s10] ss:$0 sm:$0xff] }
  0x62   : > { %1894 = vmatprep.subr.bf16.mxu1 %v2016_v16 }
  0x63   : > { %1875 = vmatpush3.bf16.msra.mxu0 %v2003_v7 }
  0x64   : > { %1876 = vmatprep.subr.bf16.mxu0 %v2005_v8 }
  0x65   : > { %1895 = vmatpush3.bf16.msra.mxu1 %v2016_v16 }
  0x66   : > { %1896 = vmatprep.subr.bf16.mxu1 %v2017_v17 }
  0x67   : > { %1877 = vmatpush3.bf16.msra.mxu0 %v2005_v8 }
  0x68   : > { %1878 = vmatprep.subr.bf16.mxu0 %v2008_v9 }
  0x69   : > { %1897 = vmatpush3.bf16.msra.mxu1 %v2017_v17 }
  0x6a   : > { %1898 = vmatprep.subr.bf16.mxu1 %v2018_v18 }
  0x6b   : > { %1879 = vmatpush3.bf16.msra.mxu0 %v2008_v9 }
  0x6d   : > { %1899 = vmatpush3.bf16.msra.mxu1 %v2018_v18 }
  0x6e   : > { %1881 = vmatmul.mubr.bf16.vlgmr.msra.gmra.mxu0 %v2010_v10 }
  0xee   : > { %v747_v19 = vpop.f32.mrf.mxu0 }
  0xf0   : > { %v749_v20 = vpop.f32.mrf.mxu0  ;;  %v912_v24 = vpop.f32.mrf.mxu1 }
  0xf2   : > { %v2383_v21 = vpop.f32.mrf.mxu0  ;;  %v914_v26 = vpop.f32.mrf.mxu1 }
  0xf4   : > { %v753_v22 = vpop.f32.mrf.mxu0  ;;  %v916_v28 = vpop.f32.mrf.mxu1 }
  0xf6   : > { %v757_v23 = vpop.f32.mrf.mxu0  ;;  %v918_v31 = vpop.f32.mrf.mxu1 }
  0xf8   : > { %v759_v25 = vpop.f32.mrf.mxu0  ;;  %v922_v34 = vpop.f32.mrf.mxu1 }
  0xfa   : > { %v761_v27 = vpop.f32.mrf.mxu0  ;;  %v924_v40 = vpop.f32.mrf.mxu1 }
  0xfc   : > { %v763_v29 = vpop.f32.mrf.mxu0  ;;  %v926_v47 = vpop.f32.mrf.mxu1 }
  0xfe   : > { %v928_v56 = vpop.f32.mrf.mxu1 }
 0x10e   : > { %v1077_v30 = vpop.f32.mrf.mxu0 }
 0x10f   : > { %v1369_v32 = vadd.f32 %v1077_v30, %v912_v24 }
 0x110   : > { %v1079_v33 = vpop.f32.mrf.mxu0  ;;  %v1862_v57 = vpop.f32.mrf.mxu1 }
 0x111   : > { %v1373_v36 = vadd.f32 %v1369_v32, %v749_v20  ;;  %v1388_v1 = vadd.f32 %v1079_v33, %v914_v26 }
 0x112   : > { %v1081_v35 = vpop.f32.mrf.mxu0  ;;  %v1230_v59 = vpop.f32.mrf.mxu1 }
 0x113   : > { %v1370_v37 = vadd.f32 %v1081_v35, %v916_v28  ;;  %v1384_v43 = vadd.f32 %v1783_v38, %v1373_v36  ;;  %v1399_v13 = vadd.f32 %v1784_v5, %v1388_v1 }
 0x114   : > { %v1083_v39 = vpop.f32.mrf.mxu0  ;;  %v1863_v62 = vpop.f32.mrf.mxu1 }
 0x115   : > { %v1374_v41 = vadd.f32 %v1370_v37, %v753_v22  ;;  %v1389_v3 = vadd.f32 %v1083_v39, %v918_v31  ;;  %v1403_v26 = vmul.f32 0.17677669, %v1399_v13 }
 0x116   : > { %v1087_v42 = vpop.f32.mrf.mxu0  ;;  %v1233_v10 = vpop.f32.mrf.mxu1 }
 0x117   : > { %v1385_v44 = vadd.f32 %v1783_v38, %v1374_v41  ;;  %v1371_v45 = vadd.f32 %v1087_v42, %v922_v34  ;;  %v1400_v14 = vadd.f32 %v1784_v5, %v1389_v3 }
 0x118   : > { %v1089_v46 = vpop.f32.mrf.mxu0 }
 0x119   : > { %v1806_v48 = vpack.c.bf16 %v1385_v44, %v1384_v43  ;;  %v1375_v50 = vadd.f32 %v1371_v45, %v759_v25  ;;  %v1390_v6 = vadd.f32 %v1089_v46, %v924_v40  ;;  %v1404_v28 = vmul.f32 0.17677669, %v1400_v14 }
 0x11a   : > { %v1091_v49 = vpop.f32.mrf.mxu0 }
 0x11b   : > { %1807 = vst [vmem:[%s598_s20] sm:$0xff] %v1806_v48   ;;  %v1372_v51 = vadd.f32 %v1091_v49, %v926_v47  ;;  %v1386_v53 = vadd.f32 %v1783_v38, %v1375_v50  ;;  %v1401_v18 = vadd.f32 %v1784_v5, %v1390_v6 }
 0x11c   : > { %v1093_v58 = vpop.f32.mrf.mxu0 }
 0x11d   : > { %v1376_v52 = vadd.f32 %v1372_v51, %v763_v29  ;;  %v1391_v61 = vadd.f32 %v1093_v58, %v928_v56  ;;  %v1405_v29 = vmul.f32 0.17677669, %v1401_v18 }
 0x11f   : > { %v1387_v54 = vadd.f32 %v1783_v38, %v1376_v52  ;;  %v1402_v9 = vadd.f32 %v1784_v5, %v1391_v61 }
 0x121   : > { %v1811_v55 = vpack.c.bf16 %v1387_v54, %v1386_v53 }
 0x123   : > { %1813 = vst [vmem:[%s598_s20 + $0x8] sm:$0xff] %v1811_v55  }
 0x12e   : > { %v1882_v60 = vpop.f32.mrf.mxu0 }
 0x12f   : > { %v1348_v63 = vadd.f32 %v1882_v60, %v1862_v57 }
 0x130   : > { %v1339_v0 = vpop.f32.mrf.mxu0 }
 0x131   : > { %v1340_v4 = vadd.f32 %v1339_v0, %v1230_v59  ;;  %v1356_v11 = vadd.f32 %v1348_v63, %v757_v23 }
 0x132   : > { %v1883_v2 = vpop.f32.mrf.mxu0 }
 0x133   : > { %v1354_v7 = vadd.f32 %v1340_v4, %v747_v19  ;;  %v1351_v8 = vadd.f32 %v1883_v2, %v1863_v62  ;;  %v1406_v19 = vmul.f32 0.17677669, %v1402_v9  ;;  %v1367_v25 = vadd.f32 %v1782_v15, %v1356_v11 }
 0x134   : > { %v1342_v12 = vpop.f32.mrf.mxu0 }
 0x135   : > { %v1357_v16 = vadd.f32 %v1351_v8, %v761_v27  ;;  %v1343_v17 = vadd.f32 %v1342_v12, %v1233_v10  ;;  %v1365_v20 = vadd.f32 %v1782_v15, %v1354_v7  ;;  %v1409_v33 = vmul.f32 %v1405_v29, %v1367_v25 }
 0x137   : > { %v1368_v22 = vadd.f32 %v1782_v15, %v1357_v16  ;;  %v1355_v24 = vadd.f32 %v1343_v17, %v2383_v21  ;;  %v1407_v31 = vmul.f32 %v1403_v26, %v1365_v20 }
 0x139   : > { %v1366_v23 = vadd.f32 %v1782_v15, %v1355_v24  ;;  %v1410_v30 = vmul.f32 %v1406_v19, %v1368_v22 }
 0x13b   : > { %v1408_v32 = vmul.f32 %v1404_v28, %v1366_v23  ;;  %v1412_v35 = vpack.c.bf16 %v1410_v30, %v1409_v33 }
 0x13d   : > { %v1411_v34 = vpack.c.bf16 %v1408_v32, %v1407_v31 }
 0x13f   : > { %1900 = vmatprep.mubr.bf16.mxu1 %v1411_v34 }
 0x140   : > { %1901 = vmatmul.mubr.bf16.vlgmr.msra.gmra.mxu1 %v1412_v35 }
 0x200   : > { %v1902_v27 = vpop.f32.mrf.mxu1 }
 0x201   : > { %1529 = vst.msk [vmem:[%s592_s17 + $0x10] sm:$0xff] %vm1526_vm0, %v1902_v27 }
 0x202   : > { %v1511_v21 = vpop.f32.mrf.mxu1 }
 0x203   : > { %1527 = vst.msk [vmem:[%s592_s17] sm:$0xff] %vm1526_vm0, %v1511_v21 }
 0x204   : > { %v1903_v36 = vpop.f32.mrf.mxu1 }
 0x205   : > { %1530 = vst.msk [vmem:[%s592_s17 + $0x18] sm:$0xff] %vm1526_vm0, %v1903_v36 }
 0x206   : > { %v1514_v37 = vpop.f32.mrf.mxu1 }
 0x207   : > { %1528 = vst.msk [vmem:[%s592_s17 + $0x8] sm:$0xff] %vm1526_vm0, %v1514_v37 }
 0x208 PF: > { %s26_s18 = sadd.s32 1, %s2025_s18  }
 0x209   : > { %p23_p4 = scmp.ge.s32.totalorder %s26_s18, 4  }
 0x20b   :  { %25 = sbr.rel (!%p23_p4) target bundleno = 2 (0x2), region = 130 }

// kernel: qagnn_mp_forward.10
= control target key start
LH: loop header
LB: loop body
LE: loop exit
PB: predicated region body
PF: predicated region fallthrough
CT: control target
= control target key end

     0   :  { %v397_v0 = vmov 0.0   ;;  %vm398_vm0 = vmmov 0   ;;  %s489_s1 = inlined_call_operand.vmem [shape: bf16[128,128], index: 1, kind: input, shape index: {}]   ;;  %s490_s3 = inlined_call_operand.vmem [shape: bf16[128,128], index: 3, kind: input, shape index: {}]   ;;  %s491_s0 = inlined_call_operand.vmem [shape: bf16[16,128], index: 0, kind: input, shape index: {}]   ;;  %s492_s2 = inlined_call_operand.vmem [shape: f32[1,128], index: 2, kind: input, shape index: {}]   ;;  %s493_s4 = inlined_call_operand.vmem [shape: f32[1,128], index: 4, kind: input, shape index: {}]   ;;  %s494_s5 = inlined_call_operand.vmem [shape: bf16[16,128], index: 5, kind: output, shape index: {}]  }
   0x1   :  { %334 = vmatprep.subr.bf16.mxu0 %v397_v0  ;;  %v376_v1 = vld [vmem:[%s489_s1 + $0x38] sm:$0xff]   ;;  %350 = vmatprep.mubr.msk.bf16.mxu0 %vm398_vm0, %v397_v0  ;;  %v377_v2 = vld [vmem:[%s489_s1 + $0x30] sm:$0xff]   ;;  %v378_v3 = vld [vmem:[%s489_s1 + $0x28] sm:$0xff]  }
   0x2   :  { %354 = vmatprep.subr.bf16.mxu1 %v397_v0  ;;  %370 = vmatprep.mubr.msk.bf16.mxu1 %vm398_vm0, %v397_v0  ;;  %v385_v4 = vld [vmem:[%s490_s3 + $0x38] sm:$0xff]   ;;  %v379_v5 = vld [vmem:[%s489_s1 + $0x20] sm:$0xff]   ;;  %v386_v6 = vld [vmem:[%s490_s3 + $0x30] sm:$0xff]  }
   0x3   :  { %335 = vmatpush3.bf16.msra.mxu0 %v376_v1  ;;  %355 = vmatpush3.bf16.msra.mxu1 %v385_v4  ;;  %v380_v7 = vld [vmem:[%s489_s1 + $0x18] sm:$0xff]   ;;  %v387_v8 = vld [vmem:[%s490_s3 + $0x28] sm:$0xff]   ;;  %v381_v9 = vld [vmem:[%s489_s1 + $0x10] sm:$0xff]  }
   0x4   :  { %336 = vmatprep.subr.bf16.mxu0 %v397_v0  ;;  %356 = vmatprep.subr.bf16.mxu1 %v397_v0  ;;  %v388_v10 = vld [vmem:[%s490_s3 + $0x20] sm:$0xff]   ;;  %v382_v11 = vld [vmem:[%s489_s1 + $0x8] sm:$0xff]   ;;  %v389_v12 = vld [vmem:[%s490_s3 + $0x18] sm:$0xff]  }
   0x5   :  { %v383_v13 = vld [vmem:[%s489_s1] sm:$0xff]   ;;  %v390_v15 = vld [vmem:[%s490_s3 + $0x10] sm:$0xff]   ;;  %v391_v16 = vld [vmem:[%s490_s3 + $0x8] sm:$0xff]  }
   0x6   :  { %v384_v14 = vld [vmem:[%s491_s0] sm:$0xff]  }
   0x7   :  { %337 = vmatpush3.bf16.msra.mxu0 %v377_v2  ;;  %357 = vmatpush3.bf16.msra.mxu1 %v386_v6  ;;  %v392_v17 = vld [vmem:[%s490_s3] sm:$0xff]  }
   0x8   :  { %338 = vmatprep.subr.bf16.mxu0 %v397_v0  ;;  %358 = vmatprep.subr.bf16.mxu1 %v397_v0  ;;  %v288_v18 = vld [vmem:[%s492_s2] ss:$0 sm:$0xff] }
   0x9   :  { %v298_v28 = vld [vmem:[%s493_s4] ss:$0 sm:$0xff] }
   0xb   :  { %339 = vmatpush3.bf16.msra.mxu0 %v378_v3  ;;  %359 = vmatpush3.bf16.msra.mxu1 %v387_v8 }
   0xc   :  { %340 = vmatprep.subr.bf16.mxu0 %v397_v0  ;;  %360 = vmatprep.subr.bf16.mxu1 %v397_v0 }
   0xf   :  { %341 = vmatpush3.bf16.msra.mxu0 %v379_v5  ;;  %361 = vmatpush3.bf16.msra.mxu1 %v388_v10 }
  0x10   :  { %342 = vmatprep.subr.bf16.mxu0 %v397_v0  ;;  %362 = vmatprep.subr.bf16.mxu1 %v397_v0 }
  0x13   :  { %343 = vmatpush3.bf16.msra.mxu0 %v380_v7  ;;  %363 = vmatpush3.bf16.msra.mxu1 %v389_v12 }
  0x14   :  { %344 = vmatprep.subr.bf16.mxu0 %v397_v0  ;;  %364 = vmatprep.subr.bf16.mxu1 %v397_v0 }
  0x17   :  { %345 = vmatpush3.bf16.msra.mxu0 %v381_v9  ;;  %365 = vmatpush3.bf16.msra.mxu1 %v390_v15 }
  0x18   :  { %346 = vmatprep.subr.bf16.mxu0 %v397_v0  ;;  %366 = vmatprep.subr.bf16.mxu1 %v397_v0 }
  0x1b   :  { %347 = vmatpush3.bf16.msra.mxu0 %v382_v11  ;;  %367 = vmatpush3.bf16.msra.mxu1 %v391_v16 }
  0x1c   :  { %348 = vmatprep.subr.bf16.mxu0 %v397_v0  ;;  %368 = vmatprep.subr.bf16.mxu1 %v397_v0 }
  0x1f   :  { %349 = vmatpush3.bf16.msra.mxu0 %v383_v13  ;;  %369 = vmatpush3.bf16.msra.mxu1 %v392_v17 }
  0x22   :  { %351 = vmatmul.mubr.bf16.vlgmr.msra.gmra.mxu0 %v384_v14 }
  0xe2   :  { %v134_v19 = vpop.f32.mrf.mxu0 }
  0xe3   :  { %v135_v21 = vadd.f32 %v288_v18, %v134_v19 }
  0xe4   :  { %v352_v20 = vpop.f32.mrf.mxu0 }
  0xe5   :  { %v141_v25 = vmax.f32 %v135_v21, 0.0 }
  0xe6   :  { %v137_v22 = vpop.f32.mrf.mxu0 }
  0xe7   :  { %v138_v23 = vadd.f32 %v288_v18, %v137_v22 }
  0xe8   :  { %v353_v24 = vpop.f32.mrf.mxu0 }
  0xe9   :  { %v142_v26 = vmax.f32 %v138_v23, 0.0 }
  0xeb   :  { %v143_v27 = vpack.c.bf16 %v142_v26, %v141_v25 }
  0xed   :  { %371 = vmatmul.mubr.bf16.vlgmr.msra.gmra.mxu1 %v143_v27 }
 0x1ad   :  { %v249_v29 = vpop.f32.mrf.mxu1 }
 0x1ae   :  { %v250_v30 = vadd.f32 %v298_v28, %v249_v29 }
 0x1af   :  { %v372_v31 = vpop.f32.mrf.mxu1 }
 0x1b0   :  { %v258_v32 = vmul.f32 0.044715, %v250_v30  ;;  %v256_v48 = vmul.f32 0.5, %v250_v30 }
 0x1b1   :  { %v252_v33 = vpop.f32.mrf.mxu1 }
 0x1b2   :  { %v260_v34 = vmul.f32 %v258_v32, %v250_v30  ;;  %v253_v35 = vadd.f32 %v298_v28, %v252_v33 }
 0x1b3   :  { %v373_v36 = vpop.f32.mrf.mxu1 }
 0x1b4   :  { %v262_v37 = vmul.f32 %v260_v34, %v250_v30  ;;  %v259_v38 = vmul.f32 0.044715, %v253_v35  ;;  %v257_v49 = vmul.f32 0.5, %v253_v35 }
 0x1b6   :  { %v264_v39 = vadd.f32 %v262_v37, %v250_v30  ;;  %v261_v40 = vmul.f32 %v259_v38, %v253_v35 }
 0x1b8   :  { %v266_v41 = vmul.f32 0.7978846, %v264_v39  ;;  %v263_v42 = vmul.f32 %v261_v40, %v253_v35 }
 0x1ba   :  { %393 = vtanh.f32 %v266_v41  ;;  %v265_v43 = vadd.f32 %v263_v42, %v253_v35 }
 0x1bc   :  { %v267_v44 = vmul.f32 0.7978846, %v265_v43 }
 0x1be   :  { %395 = vtanh.f32 %v267_v44 }
 0x1c7   :  { %v394_v45 = vpop.eup %393 }
 0x1c8   :  { %v270_v46 = vadd.f32 1.0, %v394_v45 }
 0x1ca   :  { %v272_v51 = vmul.f32 %v270_v46, %v256_v48 }
 0x1cb   :  { %v396_v47 = vpop.eup %395 }
 0x1cc   :  { %v271_v50 = vadd.f32 1.0, %v396_v47 }
 0x1ce   :  { %v273_v52 = vmul.f32 %v271_v50, %v257_v49 }
 0x1d0   :  { %v314_v53 = vpack.c.bf16 %v273_v52, %v272_v51 }
 0x1d2   :  { %315 = vst [vmem:[%s494_s5] sm:$0xff] %v314_v53  }

// kernel: qagnn_mp_forward.13
= control target key start
LH: loop header
LB: loop body
LE: loop exit
PB: predicated region body
PF: predicated region fallthrough
CT: control target
= control target key end

     0   :  { %v432_v1 = vmov 0.0   ;;  %vm433_vm0 = vmmov 0   ;;  %s535_s0 = inlined_call_operand.vmem [shape: bf16[16,128], index: 0, kind: input, shape index: {}]   ;;  %s536_s1 = inlined_call_operand.vmem [shape: bf16[16,128], index: 1, kind: input, shape index: {}]   ;;  %s537_s2 = inlined_call_operand.vmem [shape: bf16[128,128], index: 2, kind: input, shape index: {}]   ;;  %s538_s3 = inlined_call_operand.vmem [shape: f32[1,128], index: 3, kind: input, shape index: {}]   ;;  %s539_s4 = inlined_call_operand.vmem [shape: bf16[128,128], index: 4, kind: input, shape index: {}]   ;;  %s540_s5 = inlined_call_operand.vmem [shape: f32[1,128], index: 5, kind: input, shape index: {}]   ;;  %s541_s6 = inlined_call_operand.hbm [shape: f32[16,128], index: 6, kind: output, shape index: {}]  }
   0x1   :  { %v388_v0 = vld [vmem:[%s537_s2 + $0x38] sm:$0xff]   ;;  %343 = vmatprep.subr.bf16.mxu0 %v432_v1  ;;  %363 = vmatprep.subr.bf16.mxu1 %v432_v1  ;;  %v390_v3 = vld [vmem:[%s537_s2 + $0x30] sm:$0xff]   ;;  %v392_v5 = vld [vmem:[%s537_s2 + $0x28] sm:$0xff]  }
   0x2   :  { %v389_v2 = vld [vmem:[%s539_s4 + $0x38] sm:$0xff]   ;;  %344 = vmatpush3.bf16.msra.mxu0 %v388_v0  ;;  %359 = vmatprep.mubr.msk.bf16.mxu0 %vm433_vm0, %v432_v1  ;;  %v391_v4 = vld [vmem:[%s539_s4 + $0x30] sm:$0xff]   ;;  %v393_v6 = vld [vmem:[%s539_s4 + $0x28] sm:$0xff]  }
   0x3   :  { %364 = vmatpush3.bf16.msra.mxu1 %v389_v2  ;;  %345 = vmatprep.subr.bf16.mxu0 %v432_v1  ;;  %v394_v7 = vld [vmem:[%s537_s2 + $0x20] sm:$0xff]   ;;  %v396_v9 = vld [vmem:[%s537_s2 + $0x18] sm:$0xff]   ;;  %v398_v11 = vld [vmem:[%s537_s2 + $0x10] sm:$0xff]  }
   0x4   :  { %365 = vmatprep.subr.bf16.mxu1 %v432_v1  ;;  %379 = vmatprep.mubr.msk.bf16.mxu1 %vm433_vm0, %v432_v1  ;;  %v395_v8 = vld [vmem:[%s539_s4 + $0x20] sm:$0xff]   ;;  %v397_v10 = vld [vmem:[%s539_s4 + $0x18] sm:$0xff]  }
   0x6   :  { %346 = vmatpush3.bf16.msra.mxu0 %v390_v3 }
   0x7   :  { %366 = vmatpush3.bf16.msra.mxu1 %v391_v4  ;;  %347 = vmatprep.subr.bf16.mxu0 %v432_v1 }
   0x8   :  { %367 = vmatprep.subr.bf16.mxu1 %v432_v1 }
   0xa   :  { %348 = vmatpush3.bf16.msra.mxu0 %v392_v5 }
   0xb   :  { %368 = vmatpush3.bf16.msra.mxu1 %v393_v6  ;;  %349 = vmatprep.subr.bf16.mxu0 %v432_v1 }
   0xc   :  { %369 = vmatprep.subr.bf16.mxu1 %v432_v1 }
   0xe   :  { %350 = vmatpush3.bf16.msra.mxu0 %v394_v7 }
   0xf   :  { %370 = vmatpush3.bf16.msra.mxu1 %v395_v8  ;;  %351 = vmatprep.subr.bf16.mxu0 %v432_v1 }
  0x10   :  { %371 = vmatprep.subr.bf16.mxu1 %v432_v1 }
  0x12   :  { %352 = vmatpush3.bf16.msra.mxu0 %v396_v9 }
  0x13   :  { %11 = vsyncpa [#allocation3], 0  ;;  %372 = vmatpush3.bf16.msra.mxu1 %v397_v10  ;;  %353 = vmatprep.subr.bf16.mxu0 %v432_v1  ;;  %v399_v12 = vld [vmem:[%s539_s4 + $0x10] sm:$0xff]   ;;  %v400_v13 = vld [vmem:[%s537_s2 + $0x8] sm:$0xff]  }
  0x14   :  { %373 = vmatprep.subr.bf16.mxu1 %v432_v1  ;;  %v401_v14 = vld [vmem:[%s539_s4 + $0x8] sm:$0xff]   ;;  %v402_v15 = vld [vmem:[%s537_s2] sm:$0xff]  }
  0x15   :  { %v403_v16 = vld [vmem:[%s539_s4] sm:$0xff]  }
  0x16   :  { %354 = vmatpush3.bf16.msra.mxu0 %v398_v11  ;;  %v404_v17 = vld [vmem:[%s535_s0] sm:$0xff]   ;;  %s434_s0 = smov [#allocation2]  }
  0x17   :  { %374 = vmatpush3.bf16.msra.mxu1 %v399_v12  ;;  %355 = vmatprep.subr.bf16.mxu0 %v432_v1  ;;  %v405_v18 = vld [vmem:[%s536_s1] sm:$0xff]   ;;  %s294_s1 = sshll.u32 %s434_s0, 4  ;;  %s295_s1 = int_to_ptr.vmem [resolvable:$true] %s294_s1 }
  0x18   :  { %375 = vmatprep.subr.bf16.mxu1 %v432_v1  ;;  %v305_v19 = vld [vmem:[%s538_s3] ss:$0 sm:$0xff]  ;;  %s410_s3 = scalar_lea.vmem %s295_s1, 256  ;;  %p415_p1 = scmp.lt.s32.totalorder %s295_s1, %s295_s1 }
  0x19   :  { %v324_v23 = vld [vmem:[%s540_s5] ss:$0 sm:$0xff]  ;;  %p411_p0 = scmp.ne.s32.totalorder %s295_s1, %s410_s3  ;;  %p416_p2 = scmp.lt.s32.totalorder %s410_s3, %s410_s3 }
  0x1a   :  { %356 = vmatpush3.bf16.msra.mxu0 %v400_v13 }
  0x1b   :  { %376 = vmatpush3.bf16.msra.mxu1 %v401_v14  ;;  %357 = vmatprep.subr.bf16.mxu0 %v432_v1  ;;  %p417_p3 = por %p416_p2, %p415_p1 }
  0x1c   :  { %377 = vmatprep.subr.bf16.mxu1 %v432_v1 }
  0x1d   :  { %p418_p4 = pnand %p417_p3, %p411_p0 }
  0x1e   :  { %358 = vmatpush3.bf16.msra.mxu0 %v402_v15 }
  0x1f   :  { %378 = vmatpush3.bf16.msra.mxu1 %v403_v16 }
  0x21   :  { %360 = vmatmul.mubr.bf16.vlgmr.msra.gmra.mxu0 %v404_v17 }
  0x22   :  { %380 = vmatmul.mubr.bf16.vlgmr.msra.gmra.mxu1 %v405_v18 }
  0xe1   :  { %v138_v20 = vpop.f32.mrf.mxu0 }
  0xe2   :  { %v139_v21 = vadd.f32 %v305_v19, %v138_v20  ;;  %v251_v22 = vpop.f32.mrf.mxu1 }
  0xe3   :  { %v361_v24 = vpop.f32.mrf.mxu0 }
  0xe4   :  { %v258_v25 = vadd.f32 %v251_v22, %v139_v21  ;;  %v381_v26 = vpop.f32.mrf.mxu1 }
  0xe5   :  { %v141_v27 = vpop.f32.mrf.mxu0 }
  0xe6   :  { %v267_v28 = vadd.f32 %v324_v23, %v258_v25  ;;  %v142_v29 = vadd.f32 %v305_v19, %v141_v27  ;;  %v254_v30 = vpop.f32.mrf.mxu1 }
  0xe7   :  { %v362_v31 = vpop.f32.mrf.mxu0 }
  0xe8   :  { %v271_v32 = vmul.f32 0.044715, %v267_v28  ;;  %v259_v33 = vadd.f32 %v254_v30, %v142_v29  ;;  %v382_v34 = vpop.f32.mrf.mxu1  ;;  %v269_v46 = vmul.f32 0.5, %v267_v28 }
  0xea   :  { %v273_v35 = vmul.f32 %v271_v32, %v267_v28  ;;  %v268_v36 = vadd.f32 %v324_v23, %v259_v33 }
  0xec   :  { %v275_v37 = vmul.f32 %v273_v35, %v267_v28  ;;  %v272_v38 = vmul.f32 0.044715, %v268_v36  ;;  %v270_v50 = vmul.f32 0.5, %v268_v36 }
  0xee   :  { %v277_v39 = vadd.f32 %v275_v37, %v267_v28  ;;  %v274_v40 = vmul.f32 %v272_v38, %v268_v36 }
  0xf0   :  { %v276_v41 = vmul.f32 %v274_v40, %v268_v36  ;;  %v279_v42 = vmul.f32 0.7978846, %v277_v39 }
  0xf2   :  { %v278_v43 = vadd.f32 %v276_v41, %v268_v36  ;;  %406 = vtanh.f32 %v279_v42 }
  0xf4   :  { %v280_v44 = vmul.f32 0.7978846, %v278_v43 }
  0xf6   :  { %408 = vtanh.f32 %v280_v44 }
  0xff   :  { %v407_v45 = vpop.eup %406 }
 0x100   :  { %v283_v47 = vadd.f32 1.0, %v407_v45 }
 0x102   :  { %v285_v48 = vmul.f32 %v283_v47, %v269_v46 }
 0x103   :  { %v409_v49 = vpop.eup %408 }
 0x104   :  { %v284_v51 = vadd.f32 1.0, %v409_v49  ;;  %287 = vst [vmem:[#allocation2] sm:$0xff] %v285_v48 }
 0x106   :  { %v286_v52 = vmul.f32 %v284_v51, %v270_v50 }
 0x108   :  { %288 = vst [vmem:[#allocation2 + $0x8] sm:$0xff] %v286_v52 }
 0x109   :  { %421 = shalt.err (!%p418_p4)
}
 0x10a   :  { %s435_s5 = smov 128   ;;  %s436_s11 = smov 8  }
 0x10b   :  { %300 = dma.vmem_to_hbm [thread:$0]  %s295_s1, 256, %s541_s6, [#allocation3], %s435_s5, %s435_s5, %s436_s11  }
 0x10c   :  { %430 = dma.done.wait [#allocation3], 256  }
 0x10d   :  { %431 = vsyncadd [#allocation3], 4294967040 }
 0x10e   :  { %304 = vsyncpa [#allocation3], 1 }

</bundles_post_ra>
